<compile_context>
chip_gen: v7x
topology: tpu7x:2x2x1
jax: 0.10.0
libtpu: 0.0.40
codegen_flags: <defaults>
</compile_context>

<pallas_src>
import functools

import jax
import jax.numpy as jnp
import numpy as np
from jax import lax
from jax.experimental import pallas as pl
from jax.experimental.pallas import tpu as pltpu


def _lstm_kernel(x2d_ref, w_ih_ref, w_hh_ref, b_ref, out_ref, hn_ref, cn_ref,
                 *, seq_len, batch):
    """Whole-sequence LSTM recurrence in one kernel invocation.

    x2d_ref : (S*B, F)     time-major flattened inputs
    w_ih_ref: (F, 4*Hp)    gate-lane-padded input->gate weights (transposed)
    w_hh_ref: (Hp, 4*Hp)   gate-lane-padded hidden->gate weights (transposed)
    b_ref   : (1, 4*Hp)    gate-lane-padded (b_ih + b_hh)
    out_ref : (S*B, Hp)    per-step hidden states (time-major, lane-padded)
    hn_ref  : (B, Hp)      final hidden state
    cn_ref  : (B, Hp)      final cell state
    """
    Hp = hn_ref.shape[-1]

    # Hoisted input projection for the whole sequence (one batched MXU matmul),
    # bias folded in once.
    xp = (jnp.dot(x2d_ref[...], w_ih_ref[...],
                  preferred_element_type=jnp.float32)
          + b_ref[...])                                        # (S*B, 4*Hp)

    h = jnp.zeros((batch, Hp), jnp.float32)
    c = jnp.zeros((batch, Hp), jnp.float32)

    # seq_len is small and static -> fully unrolled; every slice index is static.
    for t in range(seq_len):
        gates = xp[t * batch:(t + 1) * batch, :] + jnp.dot(
            h, w_hh_ref[...], preferred_element_type=jnp.float32)  # (B, 4*Hp)

        # PyTorch gate ordering i, f, g, o; slices are 128-lane aligned views.
        i = jax.nn.sigmoid(gates[:, 0 * Hp:1 * Hp])
        f = jax.nn.sigmoid(gates[:, 1 * Hp:2 * Hp])
        g = jnp.tanh(gates[:, 2 * Hp:3 * Hp])
        o = jax.nn.sigmoid(gates[:, 3 * Hp:4 * Hp])

        c = f * c + i * g
        h = o * jnp.tanh(c)

        # 128-lane dense store into the time-major output slab.
        out_ref[pl.ds(t * batch, batch), :] = h.astype(out_ref.dtype)

    # Final states written exactly once.
    hn_ref[...] = h.astype(hn_ref.dtype)
    cn_ref[...] = c.astype(cn_ref.dtype)


def lstm_event_specific_forward(x, w_ih, w_hh, b_ih, b_hh):
    """Forward pass of LstmEventSpecific (num_layers=1, batch_first=True).

    x:    (B, S, F) float32
    w_ih: (4H, F), w_hh: (4H, H), b_ih/b_hh: (4H,)   (PyTorch parameter layout)
    returns (lstm_out (B, S, H), (hn (1, B, H), cn (1, B, H)))
    """
    B, S, F = x.shape
    H = w_ih.shape[0] // 4
    Hp = 128  # lane-padded per-gate width

    f32 = jnp.float32
    x = x.astype(f32)

    # Time-major flatten so the kernel can do one batched (S*B, F) projection.
    x2d = jnp.transpose(x, (1, 0, 2)).reshape(S * B, F)

    w_ih_t = jnp.transpose(w_ih).astype(f32)   # (F, 4H)
    w_hh_t = jnp.transpose(w_hh).astype(f32)   # (H, 4H)
    bias = (b_ih + b_hh).astype(f32)           # (4H,)

    # Lane-pad each gate's columns to Hp (zeros elsewhere) so in-kernel gate
    # slices are 128-lane aligned.  Padded rows of W_hh are zero as well, so
    # padded hidden lanes stay exactly zero through the recurrence.
    w_ih_p = jnp.pad(w_ih_t.reshape(F, 4, H),
                     ((0, 0), (0, 0), (0, Hp - H))).reshape(F, 4 * Hp)
    w_hh_p = jnp.pad(w_hh_t.reshape(H, 4, H),
                     ((0, Hp - H), (0, 0), (0, Hp - H))).reshape(Hp, 4 * Hp)
    bias_p = jnp.pad(bias.reshape(4, H),
                     ((0, 0), (0, Hp - H))).reshape(1, 4 * Hp)

    kernel = functools.partial(_lstm_kernel, seq_len=S, batch=B)

    out_p, hn_p, cn_p = pl.pallas_call(
        kernel,
        out_shape=(
            jax.ShapeDtypeStruct((S * B, Hp), f32),
            jax.ShapeDtypeStruct((B, Hp), f32),
            jax.ShapeDtypeStruct((B, Hp), f32),
        ),
        grid_spec=pltpu.PrefetchScalarGridSpec(
            num_scalar_prefetch=0,
            grid=(1,),
            in_specs=[
                pl.BlockSpec((S * B, F), lambda i: (0, 0)),
                pl.BlockSpec((F, 4 * Hp), lambda i: (0, 0)),
                pl.BlockSpec((Hp, 4 * Hp), lambda i: (0, 0)),
                pl.BlockSpec((1, 4 * Hp), lambda i: (0, 0)),
            ],
            out_specs=[
                pl.BlockSpec((S * B, Hp), lambda i: (0, 0)),
                pl.BlockSpec((B, Hp), lambda i: (0, 0)),
                pl.BlockSpec((B, Hp), lambda i: (0, 0)),
            ],
        ),
        compiler_params=pltpu.CompilerParams(
            dimension_semantics=("arbitrary",),
        ),
    )(x2d, w_ih_p, w_hh_p, bias_p)

    # (S*B, Hp) -> (B, S, H)
    lstm_out = jnp.transpose(out_p.reshape(S, B, Hp)[:, :, :H], (1, 0, 2))
    hn = hn_p[None, :, :H]                                  # (1, B, H)
    cn = cn_p[None, :, :H]                                  # (1, B, H)
    return lstm_out, (hn, cn)


def _reference_lstm(x, w_ih, w_hh, b_ih, b_hh):
    """Pure-JAX reference (lax.scan) matching PyTorch nn.LSTM semantics."""
    B, S, F = x.shape
    H = w_hh.shape[1]
    bias = b_ih + b_hh

    def step(carry, x_t):
        h, c = carry
        gates = x_t @ w_ih.T + h @ w_hh.T + bias
        i = jax.nn.sigmoid(gates[:, 0 * H:1 * H])
        f = jax.nn.sigmoid(gates[:, 1 * H:2 * H])
        g = jnp.tanh(gates[:, 2 * H:3 * H])
        o = jax.nn.sigmoid(gates[:, 3 * H:4 * H])
        c_new = f * c + i * g
        h_new = o * jnp.tanh(c_new)
        return (h_new, c_new), h_new

    h0 = jnp.zeros((B, H), jnp.float32)
    c0 = jnp.zeros((B, H), jnp.float32)
    (hn, cn), ys = lax.scan(step, (h0, c0), jnp.transpose(x, (1, 0, 2)))
    return jnp.transpose(ys, (1, 0, 2)), (hn[None], cn[None])


if __name__ == "__main__":
    # Module config: input_size=16, hidden_size=12 (default), num_layers=1
    B, S, F, H = 2, 8, 16, 12

    key = jax.random.PRNGKey(0)
    k_x, k_wih, k_whh, k_bih, k_bhh = jax.random.split(key, 5)

    # PyTorch-style uniform(-1/sqrt(H), 1/sqrt(H)) init.
    bound = 1.0 / np.sqrt(H)
    w_ih = jax.random.uniform(k_wih, (4 * H, F), jnp.float32, -bound, bound)
    w_hh = jax.random.uniform(k_whh, (4 * H, H), jnp.float32, -bound, bound)
    b_ih = jax.random.uniform(k_bih, (4 * H,), jnp.float32, -bound, bound)
    b_hh = jax.random.uniform(k_bhh, (4 * H,), jnp.float32, -bound, bound)

    x = jax.random.normal(k_x, (B, S, F), jnp.float32)

    lstm_out, (hn, cn) = lstm_event_specific_forward(x, w_ih, w_hh, b_ih, b_hh)
    jax.block_until_ready((lstm_out, hn, cn))

    # Correctness check vs pure-JAX reference.
    ref_out, (ref_hn, ref_cn) = _reference_lstm(x, w_ih, w_hh, b_ih, b_hh)
    np.testing.assert_allclose(np.asarray(lstm_out), np.asarray(ref_out),
                               atol=1e-5, rtol=1e-5)
    np.testing.assert_allclose(np.asarray(hn), np.asarray(ref_hn),
                               atol=1e-5, rtol=1e-5)
    np.testing.assert_allclose(np.asarray(cn), np.asarray(ref_cn),
                               atol=1e-5, rtol=1e-5)

    print("KERNEL_OK")
</pallas_src>

<mosaic_0001>
module attributes {stable_mosaic.version = 11 : i64} {
  func.func @_lstm_kernel(%arg0: i32, %arg1: memref<16x16xf32, #tpu.memory_space<vmem>>, %arg2: memref<16x512xf32, #tpu.memory_space<vmem>>, %arg3: memref<128x512xf32, #tpu.memory_space<vmem>>, %arg4: memref<1x512xf32, #tpu.memory_space<vmem>>, %arg5: memref<16x128xf32, #tpu.memory_space<vmem>>, %arg6: memref<2x128xf32, #tpu.memory_space<vmem>>, %arg7: memref<2x128xf32, #tpu.memory_space<vmem>>) attributes {dimension_semantics = [#tpu.dimension_semantics<arbitrary>], iteration_bounds = array<i64: 1>, scalar_prefetch = 0 : i64, scratch_operands = 0 : i64, tpu.core_type = #tpu.core_type<tc>, window_params = [{pipeline_mode = #tpu.pipeline_mode<synchronous>, transform_indices = @transform_0, window_bounds = array<i64: 16, 16>}, {pipeline_mode = #tpu.pipeline_mode<synchronous>, transform_indices = @transform_1, window_bounds = array<i64: 16, 512>}, {pipeline_mode = #tpu.pipeline_mode<synchronous>, transform_indices = @transform_2, window_bounds = array<i64: 128, 512>}, {pipeline_mode = #tpu.pipeline_mode<synchronous>, transform_indices = @transform_3, window_bounds = array<i64: 1, 512>}, {pipeline_mode = #tpu.pipeline_mode<synchronous>, transform_indices = @transform_4, window_bounds = array<i64: 16, 128>}, {pipeline_mode = #tpu.pipeline_mode<synchronous>, transform_indices = @transform_5, window_bounds = array<i64: 2, 128>}, {pipeline_mode = #tpu.pipeline_mode<synchronous>, transform_indices = @transform_6, window_bounds = array<i64: 2, 128>}]} {
    %c0 = arith.constant 0 : index
    %c0_0 = arith.constant 0 : index
    %0 = vector.load %arg1[%c0, %c0_0] : memref<16x16xf32, #tpu.memory_space<vmem>>, vector<16x16xf32>
    %c0_1 = arith.constant 0 : index
    %c0_2 = arith.constant 0 : index
    %1 = vector.load %arg2[%c0_1, %c0_2] : memref<16x512xf32, #tpu.memory_space<vmem>>, vector<16x512xf32>
    %cst = arith.constant dense<0.000000e+00> : vector<16x512xf32>
    %2 = tpu.matmul %0, %1, %cst {dimension_numbers = #tpu.dot_dimension_numbers<[1], [0], [0], [1], [0, 0, 1, 1], [], []>} : vector<16x16xf32>, vector<16x512xf32>, vector<16x512xf32> -> vector<16x512xf32>
    %c0_3 = arith.constant 0 : index
    %c0_4 = arith.constant 0 : index
    %3 = vector.load %arg4[%c0_3, %c0_4] : memref<1x512xf32, #tpu.memory_space<vmem>>, vector<1x512xf32>
    %4 = vector.broadcast %3 : vector<1x512xf32> to vector<16x512xf32>
    %5 = arith.addf %2, %4 : vector<16x512xf32>
    %cst_5 = arith.constant 0.000000e+00 : f32
    %6 = vector.broadcast %cst_5 : f32 to vector<2x128xf32>
    %cst_6 = arith.constant 0.000000e+00 : f32
    %7 = vector.broadcast %cst_6 : f32 to vector<2x128xf32>
    %8 = vector.extract_strided_slice %5 {offsets = [0, 0], sizes = [2, 512], strides = [1, 1]} : vector<16x512xf32> to vector<2x512xf32>
    %c0_7 = arith.constant 0 : index
    %c0_8 = arith.constant 0 : index
    %9 = vector.load %arg3[%c0_7, %c0_8] : memref<128x512xf32, #tpu.memory_space<vmem>>, vector<128x512xf32>
    %cst_9 = arith.constant dense<0.000000e+00> : vector<2x512xf32>
    %10 = tpu.matmul %6, %9, %cst_9 {dimension_numbers = #tpu.dot_dimension_numbers<[1], [0], [0], [1], [0, 0, 1, 1], [], []>} : vector<2x128xf32>, vector<128x512xf32>, vector<2x512xf32> -> vector<2x512xf32>
    %11 = arith.addf %8, %10 : vector<2x512xf32>
    %12 = vector.extract_strided_slice %11 {offsets = [0, 0], sizes = [2, 128], strides = [1, 1]} : vector<2x512xf32> to vector<2x128xf32>
    %13 = arith.negf %12 : vector<2x128xf32>
    %14 = math.exp %13 : vector<2x128xf32>
    %cst_10 = arith.constant 1.000000e+00 : f32
    %15 = vector.broadcast %cst_10 : f32 to vector<2x128xf32>
    %16 = arith.addf %15, %14 : vector<2x128xf32>
    %17 = arith.divf %15, %16 : vector<2x128xf32>
    %18 = vector.extract_strided_slice %11 {offsets = [0, 128], sizes = [2, 128], strides = [1, 1]} : vector<2x512xf32> to vector<2x128xf32>
    %19 = arith.negf %18 : vector<2x128xf32>
    %20 = math.exp %19 : vector<2x128xf32>
    %cst_11 = arith.constant 1.000000e+00 : f32
    %21 = vector.broadcast %cst_11 : f32 to vector<2x128xf32>
    %22 = arith.addf %21, %20 : vector<2x128xf32>
    %23 = arith.divf %21, %22 : vector<2x128xf32>
    %24 = vector.extract_strided_slice %11 {offsets = [0, 256], sizes = [2, 128], strides = [1, 1]} : vector<2x512xf32> to vector<2x128xf32>
    %25 = math.tanh %24 : vector<2x128xf32>
    %26 = vector.extract_strided_slice %11 {offsets = [0, 384], sizes = [2, 128], strides = [1, 1]} : vector<2x512xf32> to vector<2x128xf32>
    %27 = arith.negf %26 : vector<2x128xf32>
    %28 = math.exp %27 : vector<2x128xf32>
    %cst_12 = arith.constant 1.000000e+00 : f32
    %29 = vector.broadcast %cst_12 : f32 to vector<2x128xf32>
    %30 = arith.addf %29, %28 : vector<2x128xf32>
    %31 = arith.divf %29, %30 : vector<2x128xf32>
    %32 = arith.mulf %23, %7 : vector<2x128xf32>
    %33 = arith.mulf %17, %25 : vector<2x128xf32>
    %34 = arith.addf %32, %33 : vector<2x128xf32>
    %35 = math.tanh %34 : vector<2x128xf32>
    %36 = arith.mulf %31, %35 : vector<2x128xf32>
    %c0_13 = arith.constant 0 : index
    %c0_14 = arith.constant 0 : index
    %37 = vector.load %arg5[%c0_13, %c0_14] : memref<16x128xf32, #tpu.memory_space<vmem>>, vector<2x128xf32>
    tpu.vector_store %arg5[%c0_13, %c0_14], %36 {strides = array<i32>} : memref<16x128xf32, #tpu.memory_space<vmem>>, vector<2x128xf32>,
    %38 = vector.extract_strided_slice %5 {offsets = [2, 0], sizes = [2, 512], strides = [1, 1]} : vector<16x512xf32> to vector<2x512xf32>
    %c0_15 = arith.constant 0 : index
    %c0_16 = arith.constant 0 : index
    %39 = vector.load %arg3[%c0_15, %c0_16] : memref<128x512xf32, #tpu.memory_space<vmem>>, vector<128x512xf32>
    %cst_17 = arith.constant dense<0.000000e+00> : vector<2x512xf32>
    %40 = tpu.matmul %36, %39, %cst_17 {dimension_numbers = #tpu.dot_dimension_numbers<[1], [0], [0], [1], [0, 0, 1, 1], [], []>} : vector<2x128xf32>, vector<128x512xf32>, vector<2x512xf32> -> vector<2x512xf32>
    %41 = arith.addf %38, %40 : vector<2x512xf32>
    %42 = vector.extract_strided_slice %41 {offsets = [0, 0], sizes = [2, 128], strides = [1, 1]} : vector<2x512xf32> to vector<2x128xf32>
    %43 = arith.negf %42 : vector<2x128xf32>
    %44 = math.exp %43 : vector<2x128xf32>
    %cst_18 = arith.constant 1.000000e+00 : f32
    %45 = vector.broadcast %cst_18 : f32 to vector<2x128xf32>
    %46 = arith.addf %45, %44 : vector<2x128xf32>
    %47 = arith.divf %45, %46 : vector<2x128xf32>
    %48 = vector.extract_strided_slice %41 {offsets = [0, 128], sizes = [2, 128], strides = [1, 1]} : vector<2x512xf32> to vector<2x128xf32>
    %49 = arith.negf %48 : vector<2x128xf32>
    %50 = math.exp %49 : vector<2x128xf32>
    %cst_19 = arith.constant 1.000000e+00 : f32
    %51 = vector.broadcast %cst_19 : f32 to vector<2x128xf32>
    %52 = arith.addf %51, %50 : vector<2x128xf32>
    %53 = arith.divf %51, %52 : vector<2x128xf32>
    %54 = vector.extract_strided_slice %41 {offsets = [0, 256], sizes = [2, 128], strides = [1, 1]} : vector<2x512xf32> to vector<2x128xf32>
    %55 = math.tanh %54 : vector<2x128xf32>
    %56 = vector.extract_strided_slice %41 {offsets = [0, 384], sizes = [2, 128], strides = [1, 1]} : vector<2x512xf32> to vector<2x128xf32>
    %57 = arith.negf %56 : vector<2x128xf32>
    %58 = math.exp %57 : vector<2x128xf32>
    %cst_20 = arith.constant 1.000000e+00 : f32
    %59 = vector.broadcast %cst_20 : f32 to vector<2x128xf32>
    %60 = arith.addf %59, %58 : vector<2x128xf32>
    %61 = arith.divf %59, %60 : vector<2x128xf32>
    %62 = arith.mulf %53, %34 : vector<2x128xf32>
    %63 = arith.mulf %47, %55 : vector<2x128xf32>
    %64 = arith.addf %62, %63 : vector<2x128xf32>
    %65 = math.tanh %64 : vector<2x128xf32>
    %66 = arith.mulf %61, %65 : vector<2x128xf32>
    %c2 = arith.constant 2 : index
    %c0_21 = arith.constant 0 : index
    %67 = vector.load %arg5[%c2, %c0_21] : memref<16x128xf32, #tpu.memory_space<vmem>>, vector<2x128xf32>
    tpu.vector_store %arg5[%c2, %c0_21], %66 {strides = array<i32>} : memref<16x128xf32, #tpu.memory_space<vmem>>, vector<2x128xf32>,
    %68 = vector.extract_strided_slice %5 {offsets = [4, 0], sizes = [2, 512], strides = [1, 1]} : vector<16x512xf32> to vector<2x512xf32>
    %c0_22 = arith.constant 0 : index
    %c0_23 = arith.constant 0 : index
    %69 = vector.load %arg3[%c0_22, %c0_23] : memref<128x512xf32, #tpu.memory_space<vmem>>, vector<128x512xf32>
    %cst_24 = arith.constant dense<0.000000e+00> : vector<2x512xf32>
    %70 = tpu.matmul %66, %69, %cst_24 {dimension_numbers = #tpu.dot_dimension_numbers<[1], [0], [0], [1], [0, 0, 1, 1], [], []>} : vector<2x128xf32>, vector<128x512xf32>, vector<2x512xf32> -> vector<2x512xf32>
    %71 = arith.addf %68, %70 : vector<2x512xf32>
    %72 = vector.extract_strided_slice %71 {offsets = [0, 0], sizes = [2, 128], strides = [1, 1]} : vector<2x512xf32> to vector<2x128xf32>
    %73 = arith.negf %72 : vector<2x128xf32>
    %74 = math.exp %73 : vector<2x128xf32>
    %cst_25 = arith.constant 1.000000e+00 : f32
    %75 = vector.broadcast %cst_25 : f32 to vector<2x128xf32>
    %76 = arith.addf %75, %74 : vector<2x128xf32>
    %77 = arith.divf %75, %76 : vector<2x128xf32>
    %78 = vector.extract_strided_slice %71 {offsets = [0, 128], sizes = [2, 128], strides = [1, 1]} : vector<2x512xf32> to vector<2x128xf32>
    %79 = arith.negf %78 : vector<2x128xf32>
    %80 = math.exp %79 : vector<2x128xf32>
    %cst_26 = arith.constant 1.000000e+00 : f32
    %81 = vector.broadcast %cst_26 : f32 to vector<2x128xf32>
    %82 = arith.addf %81, %80 : vector<2x128xf32>
    %83 = arith.divf %81, %82 : vector<2x128xf32>
    %84 = vector.extract_strided_slice %71 {offsets = [0, 256], sizes = [2, 128], strides = [1, 1]} : vector<2x512xf32> to vector<2x128xf32>
    %85 = math.tanh %84 : vector<2x128xf32>
    %86 = vector.extract_strided_slice %71 {offsets = [0, 384], sizes = [2, 128], strides = [1, 1]} : vector<2x512xf32> to vector<2x128xf32>
    %87 = arith.negf %86 : vector<2x128xf32>
    %88 = math.exp %87 : vector<2x128xf32>
    %cst_27 = arith.constant 1.000000e+00 : f32
    %89 = vector.broadcast %cst_27 : f32 to vector<2x128xf32>
    %90 = arith.addf %89, %88 : vector<2x128xf32>
    %91 = arith.divf %89, %90 : vector<2x128xf32>
    %92 = arith.mulf %83, %64 : vector<2x128xf32>
    %93 = arith.mulf %77, %85 : vector<2x128xf32>
    %94 = arith.addf %92, %93 : vector<2x128xf32>
    %95 = math.tanh %94 : vector<2x128xf32>
    %96 = arith.mulf %91, %95 : vector<2x128xf32>
    %c4 = arith.constant 4 : index
    %c0_28 = arith.constant 0 : index
    %97 = vector.load %arg5[%c4, %c0_28] : memref<16x128xf32, #tpu.memory_space<vmem>>, vector<2x128xf32>
    tpu.vector_store %arg5[%c4, %c0_28], %96 {strides = array<i32>} : memref<16x128xf32, #tpu.memory_space<vmem>>, vector<2x128xf32>,
    %98 = vector.extract_strided_slice %5 {offsets = [6, 0], sizes = [2, 512], strides = [1, 1]} : vector<16x512xf32> to vector<2x512xf32>
    %c0_29 = arith.constant 0 : index
    %c0_30 = arith.constant 0 : index
    %99 = vector.load %arg3[%c0_29, %c0_30] : memref<128x512xf32, #tpu.memory_space<vmem>>, vector<128x512xf32>
    %cst_31 = arith.constant dense<0.000000e+00> : vector<2x512xf32>
    %100 = tpu.matmul %96, %99, %cst_31 {dimension_numbers = #tpu.dot_dimension_numbers<[1], [0], [0], [1], [0, 0, 1, 1], [], []>} : vector<2x128xf32>, vector<128x512xf32>, vector<2x512xf32> -> vector<2x512xf32>
    %101 = arith.addf %98, %100 : vector<2x512xf32>
    %102 = vector.extract_strided_slice %101 {offsets = [0, 0], sizes = [2, 128], strides = [1, 1]} : vector<2x512xf32> to vector<2x128xf32>
    %103 = arith.negf %102 : vector<2x128xf32>
    %104 = math.exp %103 : vector<2x128xf32>
    %cst_32 = arith.constant 1.000000e+00 : f32
    %105 = vector.broadcast %cst_32 : f32 to vector<2x128xf32>
    %106 = arith.addf %105, %104 : vector<2x128xf32>
    %107 = arith.divf %105, %106 : vector<2x128xf32>
    %108 = vector.extract_strided_slice %101 {offsets = [0, 128], sizes = [2, 128], strides = [1, 1]} : vector<2x512xf32> to vector<2x128xf32>
    %109 = arith.negf %108 : vector<2x128xf32>
    %110 = math.exp %109 : vector<2x128xf32>
    %cst_33 = arith.constant 1.000000e+00 : f32
    %111 = vector.broadcast %cst_33 : f32 to vector<2x128xf32>
    %112 = arith.addf %111, %110 : vector<2x128xf32>
    %113 = arith.divf %111, %112 : vector<2x128xf32>
    %114 = vector.extract_strided_slice %101 {offsets = [0, 256], sizes = [2, 128], strides = [1, 1]} : vector<2x512xf32> to vector<2x128xf32>
    %115 = math.tanh %114 : vector<2x128xf32>
    %116 = vector.extract_strided_slice %101 {offsets = [0, 384], sizes = [2, 128], strides = [1, 1]} : vector<2x512xf32> to vector<2x128xf32>
    %117 = arith.negf %116 : vector<2x128xf32>
    %118 = math.exp %117 : vector<2x128xf32>
    %cst_34 = arith.constant 1.000000e+00 : f32
    %119 = vector.broadcast %cst_34 : f32 to vector<2x128xf32>
    %120 = arith.addf %119, %118 : vector<2x128xf32>
    %121 = arith.divf %119, %120 : vector<2x128xf32>
    %122 = arith.mulf %113, %94 : vector<2x128xf32>
    %123 = arith.mulf %107, %115 : vector<2x128xf32>
    %124 = arith.addf %122, %123 : vector<2x128xf32>
    %125 = math.tanh %124 : vector<2x128xf32>
    %126 = arith.mulf %121, %125 : vector<2x128xf32>
    %c6 = arith.constant 6 : index
    %c0_35 = arith.constant 0 : index
    %127 = vector.load %arg5[%c6, %c0_35] : memref<16x128xf32, #tpu.memory_space<vmem>>, vector<2x128xf32>
    tpu.vector_store %arg5[%c6, %c0_35], %126 {strides = array<i32>} : memref<16x128xf32, #tpu.memory_space<vmem>>, vector<2x128xf32>,
    %128 = vector.extract_strided_slice %5 {offsets = [8, 0], sizes = [2, 512], strides = [1, 1]} : vector<16x512xf32> to vector<2x512xf32>
    %c0_36 = arith.constant 0 : index
    %c0_37 = arith.constant 0 : index
    %129 = vector.load %arg3[%c0_36, %c0_37] : memref<128x512xf32, #tpu.memory_space<vmem>>, vector<128x512xf32>
    %cst_38 = arith.constant dense<0.000000e+00> : vector<2x512xf32>
    %130 = tpu.matmul %126, %129, %cst_38 {dimension_numbers = #tpu.dot_dimension_numbers<[1], [0], [0], [1], [0, 0, 1, 1], [], []>} : vector<2x128xf32>, vector<128x512xf32>, vector<2x512xf32> -> vector<2x512xf32>
    %131 = arith.addf %128, %130 : vector<2x512xf32>
    %132 = vector.extract_strided_slice %131 {offsets = [0, 0], sizes = [2, 128], strides = [1, 1]} : vector<2x512xf32> to vector<2x128xf32>
    %133 = arith.negf %132 : vector<2x128xf32>
    %134 = math.exp %133 : vector<2x128xf32>
    %cst_39 = arith.constant 1.000000e+00 : f32
    %135 = vector.broadcast %cst_39 : f32 to vector<2x128xf32>
    %136 = arith.addf %135, %134 : vector<2x128xf32>
    %137 = arith.divf %135, %136 : vector<2x128xf32>
    %138 = vector.extract_strided_slice %131 {offsets = [0, 128], sizes = [2, 128], strides = [1, 1]} : vector<2x512xf32> to vector<2x128xf32>
    %139 = arith.negf %138 : vector<2x128xf32>
    %140 = math.exp %139 : vector<2x128xf32>
    %cst_40 = arith.constant 1.000000e+00 : f32
    %141 = vector.broadcast %cst_40 : f32 to vector<2x128xf32>
    %142 = arith.addf %141, %140 : vector<2x128xf32>
    %143 = arith.divf %141, %142 : vector<2x128xf32>
    %144 = vector.extract_strided_slice %131 {offsets = [0, 256], sizes = [2, 128], strides = [1, 1]} : vector<2x512xf32> to vector<2x128xf32>
    %145 = math.tanh %144 : vector<2x128xf32>
    %146 = vector.extract_strided_slice %131 {offsets = [0, 384], sizes = [2, 128], strides = [1, 1]} : vector<2x512xf32> to vector<2x128xf32>
    %147 = arith.negf %146 : vector<2x128xf32>
    %148 = math.exp %147 : vector<2x128xf32>
    %cst_41 = arith.constant 1.000000e+00 : f32
    %149 = vector.broadcast %cst_41 : f32 to vector<2x128xf32>
    %150 = arith.addf %149, %148 : vector<2x128xf32>
    %151 = arith.divf %149, %150 : vector<2x128xf32>
    %152 = arith.mulf %143, %124 : vector<2x128xf32>
    %153 = arith.mulf %137, %145 : vector<2x128xf32>
    %154 = arith.addf %152, %153 : vector<2x128xf32>
    %155 = math.tanh %154 : vector<2x128xf32>
    %156 = arith.mulf %151, %155 : vector<2x128xf32>
    %c8 = arith.constant 8 : index
    %c0_42 = arith.constant 0 : index
    %157 = vector.load %arg5[%c8, %c0_42] : memref<16x128xf32, #tpu.memory_space<vmem>>, vector<2x128xf32>
    tpu.vector_store %arg5[%c8, %c0_42], %156 {strides = array<i32>} : memref<16x128xf32, #tpu.memory_space<vmem>>, vector<2x128xf32>,
    %158 = vector.extract_strided_slice %5 {offsets = [10, 0], sizes = [2, 512], strides = [1, 1]} : vector<16x512xf32> to vector<2x512xf32>
    %c0_43 = arith.constant 0 : index
    %c0_44 = arith.constant 0 : index
    %159 = vector.load %arg3[%c0_43, %c0_44] : memref<128x512xf32, #tpu.memory_space<vmem>>, vector<128x512xf32>
    %cst_45 = arith.constant dense<0.000000e+00> : vector<2x512xf32>
    %160 = tpu.matmul %156, %159, %cst_45 {dimension_numbers = #tpu.dot_dimension_numbers<[1], [0], [0], [1], [0, 0, 1, 1], [], []>} : vector<2x128xf32>, vector<128x512xf32>, vector<2x512xf32> -> vector<2x512xf32>
    %161 = arith.addf %158, %160 : vector<2x512xf32>
    %162 = vector.extract_strided_slice %161 {offsets = [0, 0], sizes = [2, 128], strides = [1, 1]} : vector<2x512xf32> to vector<2x128xf32>
    %163 = arith.negf %162 : vector<2x128xf32>
    %164 = math.exp %163 : vector<2x128xf32>
    %cst_46 = arith.constant 1.000000e+00 : f32
    %165 = vector.broadcast %cst_46 : f32 to vector<2x128xf32>
    %166 = arith.addf %165, %164 : vector<2x128xf32>
    %167 = arith.divf %165, %166 : vector<2x128xf32>
    %168 = vector.extract_strided_slice %161 {offsets = [0, 128], sizes = [2, 128], strides = [1, 1]} : vector<2x512xf32> to vector<2x128xf32>
    %169 = arith.negf %168 : vector<2x128xf32>
    %170 = math.exp %169 : vector<2x128xf32>
    %cst_47 = arith.constant 1.000000e+00 : f32
    %171 = vector.broadcast %cst_47 : f32 to vector<2x128xf32>
    %172 = arith.addf %171, %170 : vector<2x128xf32>
    %173 = arith.divf %171, %172 : vector<2x128xf32>
    %174 = vector.extract_strided_slice %161 {offsets = [0, 256], sizes = [2, 128], strides = [1, 1]} : vector<2x512xf32> to vector<2x128xf32>
    %175 = math.tanh %174 : vector<2x128xf32>
    %176 = vector.extract_strided_slice %161 {offsets = [0, 384], sizes = [2, 128], strides = [1, 1]} : vector<2x512xf32> to vector<2x128xf32>
    %177 = arith.negf %176 : vector<2x128xf32>
    %178 = math.exp %177 : vector<2x128xf32>
    %cst_48 = arith.constant 1.000000e+00 : f32
    %179 = vector.broadcast %cst_48 : f32 to vector<2x128xf32>
    %180 = arith.addf %179, %178 : vector<2x128xf32>
    %181 = arith.divf %179, %180 : vector<2x128xf32>
    %182 = arith.mulf %173, %154 : vector<2x128xf32>
    %183 = arith.mulf %167, %175 : vector<2x128xf32>
    %184 = arith.addf %182, %183 : vector<2x128xf32>
    %185 = math.tanh %184 : vector<2x128xf32>
    %186 = arith.mulf %181, %185 : vector<2x128xf32>
    %c10 = arith.constant 10 : index
    %c0_49 = arith.constant 0 : index
    %187 = vector.load %arg5[%c10, %c0_49] : memref<16x128xf32, #tpu.memory_space<vmem>>, vector<2x128xf32>
    tpu.vector_store %arg5[%c10, %c0_49], %186 {strides = array<i32>} : memref<16x128xf32, #tpu.memory_space<vmem>>, vector<2x128xf32>,
    %188 = vector.extract_strided_slice %5 {offsets = [12, 0], sizes = [2, 512], strides = [1, 1]} : vector<16x512xf32> to vector<2x512xf32>
    %c0_50 = arith.constant 0 : index
    %c0_51 = arith.constant 0 : index
    %189 = vector.load %arg3[%c0_50, %c0_51] : memref<128x512xf32, #tpu.memory_space<vmem>>, vector<128x512xf32>
    %cst_52 = arith.constant dense<0.000000e+00> : vector<2x512xf32>
    %190 = tpu.matmul %186, %189, %cst_52 {dimension_numbers = #tpu.dot_dimension_numbers<[1], [0], [0], [1], [0, 0, 1, 1], [], []>} : vector<2x128xf32>, vector<128x512xf32>, vector<2x512xf32> -> vector<2x512xf32>
    %191 = arith.addf %188, %190 : vector<2x512xf32>
    %192 = vector.extract_strided_slice %191 {offsets = [0, 0], sizes = [2, 128], strides = [1, 1]} : vector<2x512xf32> to vector<2x128xf32>
    %193 = arith.negf %192 : vector<2x128xf32>
    %194 = math.exp %193 : vector<2x128xf32>
    %cst_53 = arith.constant 1.000000e+00 : f32
    %195 = vector.broadcast %cst_53 : f32 to vector<2x128xf32>
    %196 = arith.addf %195, %194 : vector<2x128xf32>
    %197 = arith.divf %195, %196 : vector<2x128xf32>
    %198 = vector.extract_strided_slice %191 {offsets = [0, 128], sizes = [2, 128], strides = [1, 1]} : vector<2x512xf32> to vector<2x128xf32>
    %199 = arith.negf %198 : vector<2x128xf32>
    %200 = math.exp %199 : vector<2x128xf32>
    %cst_54 = arith.constant 1.000000e+00 : f32
    %201 = vector.broadcast %cst_54 : f32 to vector<2x128xf32>
    %202 = arith.addf %201, %200 : vector<2x128xf32>
    %203 = arith.divf %201, %202 : vector<2x128xf32>
    %204 = vector.extract_strided_slice %191 {offsets = [0, 256], sizes = [2, 128], strides = [1, 1]} : vector<2x512xf32> to vector<2x128xf32>
    %205 = math.tanh %204 : vector<2x128xf32>
    %206 = vector.extract_strided_slice %191 {offsets = [0, 384], sizes = [2, 128], strides = [1, 1]} : vector<2x512xf32> to vector<2x128xf32>
    %207 = arith.negf %206 : vector<2x128xf32>
    %208 = math.exp %207 : vector<2x128xf32>
    %cst_55 = arith.constant 1.000000e+00 : f32
    %209 = vector.broadcast %cst_55 : f32 to vector<2x128xf32>
    %210 = arith.addf %209, %208 : vector<2x128xf32>
    %211 = arith.divf %209, %210 : vector<2x128xf32>
    %212 = arith.mulf %203, %184 : vector<2x128xf32>
    %213 = arith.mulf %197, %205 : vector<2x128xf32>
    %214 = arith.addf %212, %213 : vector<2x128xf32>
    %215 = math.tanh %214 : vector<2x128xf32>
    %216 = arith.mulf %211, %215 : vector<2x128xf32>
    %c12 = arith.constant 12 : index
    %c0_56 = arith.constant 0 : index
    %217 = vector.load %arg5[%c12, %c0_56] : memref<16x128xf32, #tpu.memory_space<vmem>>, vector<2x128xf32>
    tpu.vector_store %arg5[%c12, %c0_56], %216 {strides = array<i32>} : memref<16x128xf32, #tpu.memory_space<vmem>>, vector<2x128xf32>,
    %218 = vector.extract_strided_slice %5 {offsets = [14, 0], sizes = [2, 512], strides = [1, 1]} : vector<16x512xf32> to vector<2x512xf32>
    %c0_57 = arith.constant 0 : index
    %c0_58 = arith.constant 0 : index
    %219 = vector.load %arg3[%c0_57, %c0_58] : memref<128x512xf32, #tpu.memory_space<vmem>>, vector<128x512xf32>
    %cst_59 = arith.constant dense<0.000000e+00> : vector<2x512xf32>
    %220 = tpu.matmul %216, %219, %cst_59 {dimension_numbers = #tpu.dot_dimension_numbers<[1], [0], [0], [1], [0, 0, 1, 1], [], []>} : vector<2x128xf32>, vector<128x512xf32>, vector<2x512xf32> -> vector<2x512xf32>
    %221 = arith.addf %218, %220 : vector<2x512xf32>
    %222 = vector.extract_strided_slice %221 {offsets = [0, 0], sizes = [2, 128], strides = [1, 1]} : vector<2x512xf32> to vector<2x128xf32>
    %223 = arith.negf %222 : vector<2x128xf32>
    %224 = math.exp %223 : vector<2x128xf32>
    %cst_60 = arith.constant 1.000000e+00 : f32
    %225 = vector.broadcast %cst_60 : f32 to vector<2x128xf32>
    %226 = arith.addf %225, %224 : vector<2x128xf32>
    %227 = arith.divf %225, %226 : vector<2x128xf32>
    %228 = vector.extract_strided_slice %221 {offsets = [0, 128], sizes = [2, 128], strides = [1, 1]} : vector<2x512xf32> to vector<2x128xf32>
    %229 = arith.negf %228 : vector<2x128xf32>
    %230 = math.exp %229 : vector<2x128xf32>
    %cst_61 = arith.constant 1.000000e+00 : f32
    %231 = vector.broadcast %cst_61 : f32 to vector<2x128xf32>
    %232 = arith.addf %231, %230 : vector<2x128xf32>
    %233 = arith.divf %231, %232 : vector<2x128xf32>
    %234 = vector.extract_strided_slice %221 {offsets = [0, 256], sizes = [2, 128], strides = [1, 1]} : vector<2x512xf32> to vector<2x128xf32>
    %235 = math.tanh %234 : vector<2x128xf32>
    %236 = vector.extract_strided_slice %221 {offsets = [0, 384], sizes = [2, 128], strides = [1, 1]} : vector<2x512xf32> to vector<2x128xf32>
    %237 = arith.negf %236 : vector<2x128xf32>
    %238 = math.exp %237 : vector<2x128xf32>
    %cst_62 = arith.constant 1.000000e+00 : f32
    %239 = vector.broadcast %cst_62 : f32 to vector<2x128xf32>
    %240 = arith.addf %239, %238 : vector<2x128xf32>
    %241 = arith.divf %239, %240 : vector<2x128xf32>
    %242 = arith.mulf %233, %214 : vector<2x128xf32>
    %243 = arith.mulf %227, %235 : vector<2x128xf32>
    %244 = arith.addf %242, %243 : vector<2x128xf32>
    %245 = math.tanh %244 : vector<2x128xf32>
    %246 = arith.mulf %241, %245 : vector<2x128xf32>
    %c14 = arith.constant 14 : index
    %c0_63 = arith.constant 0 : index
    %247 = vector.load %arg5[%c14, %c0_63] : memref<16x128xf32, #tpu.memory_space<vmem>>, vector<2x128xf32>
    tpu.vector_store %arg5[%c14, %c0_63], %246 {strides = array<i32>} : memref<16x128xf32, #tpu.memory_space<vmem>>, vector<2x128xf32>,
    %c0_64 = arith.constant 0 : index
    %c0_65 = arith.constant 0 : index
    %248 = vector.load %arg6[%c0_64, %c0_65] : memref<2x128xf32, #tpu.memory_space<vmem>>, vector<2x128xf32>
    tpu.vector_store %arg6[%c0_64, %c0_65], %246 {strides = array<i32>} : memref<2x128xf32, #tpu.memory_space<vmem>>, vector<2x128xf32>,
    %c0_66 = arith.constant 0 : index
    %c0_67 = arith.constant 0 : index
    %249 = vector.load %arg7[%c0_66, %c0_67] : memref<2x128xf32, #tpu.memory_space<vmem>>, vector<2x128xf32>
    tpu.vector_store %arg7[%c0_66, %c0_67], %244 {strides = array<i32>} : memref<2x128xf32, #tpu.memory_space<vmem>>, vector<2x128xf32>,
    return
  }
  func.func @transform_0(%arg0: i32) -> (i32, i32) {
    %c0_i32 = arith.constant 0 : i32
    %c0_i32_0 = arith.constant 0 : i32
    %c0_i32_1 = arith.constant 0 : i32
    return %c0_i32, %c0_i32_0 : i32, i32
  }
  func.func @transform_1(%arg0: i32) -> (i32, i32) {
    %c0_i32 = arith.constant 0 : i32
    %c0_i32_0 = arith.constant 0 : i32
    %c0_i32_1 = arith.constant 0 : i32
    return %c0_i32, %c0_i32_0 : i32, i32
  }
  func.func @transform_2(%arg0: i32) -> (i32, i32) {
    %c0_i32 = arith.constant 0 : i32
    %c0_i32_0 = arith.constant 0 : i32
    %c0_i32_1 = arith.constant 0 : i32
    return %c0_i32, %c0_i32_0 : i32, i32
  }
  func.func @transform_3(%arg0: i32) -> (i32, i32) {
    %c0_i32 = arith.constant 0 : i32
    %c0_i32_0 = arith.constant 0 : i32
    %c0_i32_1 = arith.constant 0 : i32
    return %c0_i32, %c0_i32_0 : i32, i32
  }
  func.func @transform_4(%arg0: i32) -> (i32, i32) {
    %c0_i32 = arith.constant 0 : i32
    %c0_i32_0 = arith.constant 0 : i32
    %c0_i32_1 = arith.constant 0 : i32
    return %c0_i32, %c0_i32_0 : i32, i32
  }
  func.func @transform_5(%arg0: i32) -> (i32, i32) {
    %c0_i32 = arith.constant 0 : i32
    %c0_i32_0 = arith.constant 0 : i32
    %c0_i32_1 = arith.constant 0 : i32
    return %c0_i32, %c0_i32_0 : i32, i32
  }
  func.func @transform_6(%arg0: i32) -> (i32, i32) {
    %c0_i32 = arith.constant 0 : i32
    %c0_i32_0 = arith.constant 0 : i32
    %c0_i32_1 = arith.constant 0 : i32
    return %c0_i32, %c0_i32_0 : i32, i32
  }
}

</mosaic_0001>

<bundles_post_ra>
// kernel: tpu_custom_call.1
= control target key start
LH: loop header
LB: loop body
LE: loop exit
PB: predicated region body
PF: predicated region fallthrough
CT: control target
= control target key end

     0   :  { %12 = vsyncpa [#allocation3], 0  ;;  %s3719_s0 = inlined_call_operand.hbm [shape: f32[16,16], index: 0, kind: input, shape index: {}]   ;;  %s3720_s1 = inlined_call_operand.hbm [shape: f32[16,512], index: 1, kind: input, shape index: {}]   ;;  %s3721_s2 = inlined_call_operand.hbm [shape: f32[128,512], index: 2, kind: input, shape index: {}]   ;;  %s3722_s3 = inlined_call_operand.vmem [shape: f32[1,512], index: 3, kind: input, shape index: {}]   ;;  %s3723_s4 = inlined_call_operand.hbm [shape: f32[16,128], index: 4, kind: output, shape index: {0}]   ;;  %s3724_s5 = inlined_call_operand.hbm [shape: f32[2,128], index: 5, kind: output, shape index: {1}]   ;;  %s3725_s6 = inlined_call_operand.hbm [shape: f32[2,128], index: 6, kind: output, shape index: {2}]  }
   0x1   :  { %13 = vsyncpa [#allocation6], 0 }
   0x2   :  { %14 = vsyncpa [#allocation4], 0 }
   0x3   :  { %15 = vsyncpa [#allocation10], 0  ;;  %s3118_s21 = smov [#allocation5]   ;;  %s2978_s25 = scalar_lea.hbm %s3720_s1, 1024 }
   0x4   :  { %s33_s22 = sshll.u32 %s3118_s21, 4  ;;  %p2979_p0 = scmp.ne.s32.totalorder %s3720_s1, %s2978_s25  ;;  %s34_s22 = int_to_ptr.vmem [resolvable:$true] %s33_s22 }
   0x5   :  { %p2982_p1 = scmp.lt.u32.totalorder %s2978_s25, %s3720_s1 }
   0x7   :  { %p2984_p2 = pnand %p2982_p1, %p2979_p0 }
   0x9   :  { %2987 = shalt.err (!%p2984_p2)
}
   0xa   :  { %s2988_s30 = scalar_lea.vmem %s34_s22, 1024  ;;  %p2993_p4 = scmp.lt.s32.totalorder %s34_s22, %s34_s22 }
   0xb   :  { %p2989_p3 = scmp.ne.s32.totalorder %s34_s22, %s2988_s30  ;;  %p2994_p5 = scmp.lt.s32.totalorder %s2988_s30, %s2988_s30 }
   0xd   :  { %p2995_p6 = por %p2994_p5, %p2993_p4 }
   0xf   :  { %p2996_p7 = pnand %p2995_p6, %p2989_p3 }
  0x11   :  { %2999 = shalt.err (!%p2996_p7)
}
  0x12   :  { %s3119_s7 = smov 512   ;;  %s3120_s8 = smov 32  }
  0x13   :  { %39 = dma.hbm_to_vmem [thread:$0]  %s3720_s1, 1024, %s34_s22, [#allocation6], %s3119_s7, %s3119_s7, %s3120_s8  }
  0x14   :  { %s3121_s11 = smov [#allocation2]   ;;  %s3000_s15 = scalar_lea.hbm %s3719_s0, 256 }
  0x15   :  { %s21_s12 = sshll.u32 %s3121_s11, 4  ;;  %p3001_p8 = scmp.ne.s32.totalorder %s3719_s0, %s3000_s15  ;;  %s22_s12 = int_to_ptr.vmem [resolvable:$true] %s21_s12 }
  0x16   :  { %p3004_p9 = scmp.lt.u32.totalorder %s3000_s15, %s3719_s0 }
  0x18   :  { %p3006_p10 = pnand %p3004_p9, %p3001_p8 }
  0x1a   :  { %3009 = shalt.err (!%p3006_p10)
}
  0x1b   :  { %s3010_s20 = scalar_lea.vmem %s22_s12, 256  ;;  %p3015_p12 = scmp.lt.s32.totalorder %s22_s12, %s22_s12 }
  0x1c   :  { %p3011_p11 = scmp.ne.s32.totalorder %s22_s12, %s3010_s20  ;;  %p3016_p13 = scmp.lt.s32.totalorder %s3010_s20, %s3010_s20 }
  0x1e   :  { %p3017_p0 = por %p3016_p13, %p3015_p12 }
  0x20   :  { %p3018_p1 = pnand %p3017_p0, %p3011_p11 }
  0x22   :  { %3021 = shalt.err (!%p3018_p1)
}
  0x23   :  { %s3122_s1 = smov 128   ;;  %s3123_s21 = smov 8  }
  0x24   :  { %27 = dma.hbm_to_vmem [thread:$0]  %s3719_s0, 256, %s22_s12, [#allocation3], %s3122_s1, %s3122_s1, %s3123_s21  }
  0x25   :  { %s3124_s24 = smov [#allocation7]   ;;  %s3022_s28 = scalar_lea.hbm %s3721_s2, 8192 }
  0x26   :  { %s45_s25 = sshll.u32 %s3124_s24, 4  ;;  %p3023_p2 = scmp.ne.s32.totalorder %s3721_s2, %s3022_s28  ;;  %s46_s25 = int_to_ptr.vmem [resolvable:$true] %s45_s25 }
  0x27   :  { %p3026_p3 = scmp.lt.u32.totalorder %s3022_s28, %s3721_s2 }
  0x29   :  { %p3028_p4 = pnand %p3026_p3, %p3023_p2 }
  0x2b   :  { %3031 = shalt.err (!%p3028_p4)
}
  0x2c   :  { %s3032_s11 = scalar_lea.vmem %s46_s25, 8192  ;;  %p3037_p6 = scmp.lt.s32.totalorder %s46_s25, %s46_s25 }
  0x2d   :  { %p3033_p5 = scmp.ne.s32.totalorder %s46_s25, %s3032_s11  ;;  %p3038_p7 = scmp.lt.s32.totalorder %s3032_s11, %s3032_s11 }
  0x2f   :  { %p3039_p8 = por %p3038_p7, %p3037_p6 }
  0x31   :  { %p3040_p9 = pnand %p3039_p8, %p3033_p5 }
  0x33   :  { %3043 = shalt.err (!%p3040_p9)
}
  0x34   :  { %51 = dma.hbm_to_vmem [thread:$0]  %s3721_s2, 8192, %s46_s25, [#allocation6], %s3119_s7, %s3119_s7, %s3120_s8  }
  0x35   :  { %3110 = dma.done.wait [#allocation3], 256  }
  0x36   :  { %3111 = vsyncadd [#allocation3], 4294967040 }
  0x37   :  { %3112 = dma.done.wait [#allocation6], 9216  }
  0x38   :  { %3113 = vsyncadd [#allocation6], 4294958080  ;;  %v3125_v0 = vmov 0.0   ;;  %v66_v1 = vld [vmem:[#allocation5 + $0x8] sm:$0xff]  ;;  %v68_v3 = vld [vmem:[#allocation5 + $0x18] sm:$0xff]  ;;  %vm95_vm0 = vcmask 130048  }
  0x39   :  { %166 = vmatprep.mubr.f32.mxu0 %v3125_v0  ;;  %243 = vmatprep.mubr.f32.mxu1 %v3125_v0  ;;  %v70_v2 = vld [vmem:[#allocation5 + $0x28] sm:$0xff]  ;;  %v72_v5 = vld [vmem:[#allocation5 + $0x38] sm:$0xff]  ;;  %v65_v6 = vld [vmem:[#allocation5] sm:$0xff]  ;;  %s3127_s13 = smov [#allocation8]   ;;  %s3128_s15 = smov [#allocation11]  }
  0x3a   :  { %v2319_v4 = vpack.c.bf16 %v70_v2, %v66_v1  ;;  %v69_v7 = vld [vmem:[#allocation5 + $0x20] sm:$0xff]  ;;  %v2323_v8 = vpack.c.bf16 %v72_v5, %v68_v3  ;;  %v67_v10 = vld [vmem:[#allocation5 + $0x10] sm:$0xff]  ;;  %v257_v14 = vld [vmem:[#allocation7 + $0x8] sm:$0xff]  ;;  %s2251_s14 = sshll.u32 %s3127_s13, 4  ;;  %s2274_s16 = sshll.u32 %s3128_s15, 4  ;;  %s3666_s14 = int_to_ptr.vmem [resolvable:$true] %s2251_s14  ;;  %s3668_s16 = int_to_ptr.vmem [resolvable:$true] %s2274_s16 }
  0x3b   :  { %v2321_v9 = vpack.c.bf16 %v69_v7, %v65_v6  ;;  %v71_v11 = vld [vmem:[#allocation5 + $0x30] sm:$0xff]  ;;  %v261_v15 = vld [vmem:[#allocation7 + $0x28] sm:$0xff]  ;;  %v259_v16 = vld [vmem:[#allocation7 + $0x18] sm:$0xff] }
  0x3c   :  { %v63_v12 = vld [vmem:[#allocation2] sm:$0xff]  ;;  %2320 = vmatprep.subr.bf16.mxu0 %v2319_v4  ;;  %v2325_v13 = vpack.c.bf16 %v71_v11, %v67_v10  ;;  %2324 = vmatprep.subr.bf16.mxu1 %v2323_v8  ;;  %v3211_v17 = vpack.c.bf16 %v261_v15, %v257_v14  ;;  %v263_v18 = vld [vmem:[#allocation7 + $0x38] sm:$0xff]  ;;  %v256_v19 = vld [vmem:[#allocation7] sm:$0xff] }
  0x3d   :  { %2322 = vmatpush1.bf16.msra.mxu0 %v2321_v9  ;;  %v260_v20 = vld [vmem:[#allocation7 + $0x20] sm:$0xff]  ;;  %v3213_v21 = vpack.c.bf16 %v263_v18, %v259_v16  ;;  %v258_v23 = vld [vmem:[#allocation7 + $0x10] sm:$0xff]  ;;  %v265_v25 = vld [vmem:[#allocation7 + $0x48] sm:$0xff] }
  0x3e   :  { %2326 = vmatpush1.bf16.msra.mxu1 %v2325_v13  ;;  %v3215_v22 = vpack.c.bf16 %v260_v20, %v256_v19  ;;  %v262_v24 = vld [vmem:[#allocation7 + $0x30] sm:$0xff]  ;;  %2328 = vmatprep.subr.bf16.mxu0 %v3211_v17  ;;  %v269_v27 = vld [vmem:[#allocation7 + $0x68] sm:$0xff]  ;;  %v267_v28 = vld [vmem:[#allocation7 + $0x58] sm:$0xff] }
  0x3f   :  { %v3218_v26 = vpack.c.bf16 %v262_v24, %v258_v23  ;;  %v271_v29 = vld [vmem:[#allocation7 + $0x78] sm:$0xff]  ;;  %2360 = vmatprep.subr.bf16.mxu1 %v3213_v21  ;;  %v3222_v30 = vpack.c.bf16 %v269_v27, %v265_v25  ;;  %v264_v32 = vld [vmem:[#allocation7 + $0x40] sm:$0xff]  ;;  %v266_v34 = vld [vmem:[#allocation7 + $0x50] sm:$0xff] }
  0x40   :  { %2291 = vmatmul.mubr.msk.f32.vlgmr.msra.gmra.mrb[0].mxu0 %vm95_vm0, %v63_v12  ;;  %v3224_v31 = vpack.c.bf16 %v271_v29, %v267_v28  ;;  %v268_v33 = vld [vmem:[#allocation7 + $0x60] sm:$0xff]  ;;  %v270_v36 = vld [vmem:[#allocation7 + $0x70] sm:$0xff]  ;;  %v273_v37 = vld [vmem:[#allocation7 + $0x88] sm:$0xff] }
  0x41   :  { %2293 = vmatmul.mubr.msk.f32.vlgmr.msra.gmra.mrb[0].mxu1 %vm95_vm0, %v63_v12  ;;  %2330 = vmatpush1.bf16.msra.mxu0 %v3215_v22  ;;  %v3228_v35 = vpack.c.bf16 %v268_v33, %v264_v32  ;;  %v277_v38 = vld [vmem:[#allocation7 + $0xa8] sm:$0xff]  ;;  %v3232_v39 = vpack.c.bf16 %v270_v36, %v266_v34  ;;  %v275_v41 = vld [vmem:[#allocation7 + $0x98] sm:$0xff]  ;;  %v272_v43 = vld [vmem:[#allocation7 + $0x80] sm:$0xff] }
  0x42   :  { %2362 = vmatpush1.bf16.msra.mxu1 %v3218_v26  ;;  %2332 = vmatprep.subr.bf16.mxu0 %v3222_v30  ;;  %v3234_v40 = vpack.c.bf16 %v277_v38, %v273_v37  ;;  %v279_v42 = vld [vmem:[#allocation7 + $0xb8] sm:$0xff]  ;;  %v276_v45 = vld [vmem:[#allocation7 + $0xa0] sm:$0xff]  ;;  %v274_v46 = vld [vmem:[#allocation7 + $0x90] sm:$0xff] }
  0x43   :  { %2364 = vmatprep.subr.bf16.mxu1 %v3224_v31  ;;  %v3237_v44 = vpack.c.bf16 %v279_v42, %v275_v41  ;;  %v278_v47 = vld [vmem:[#allocation7 + $0xb0] sm:$0xff]  ;;  %172 = vmatprep.mubr.f32.mxu0 %v3125_v0  ;;  %v281_v48 = vld [vmem:[#allocation7 + $0xc8] sm:$0xff]  ;;  %v283_v50 = vld [vmem:[#allocation7 + $0xd8] sm:$0xff]  ;;  %v3242_v51 = vpack.c.bf16 %v276_v45, %v272_v43 }
  0x44   :  { %v285_v49 = vld [vmem:[#allocation7 + $0xe8] sm:$0xff]  ;;  %249 = vmatprep.mubr.f32.mxu1 %v3125_v0  ;;  %v287_v52 = vld [vmem:[#allocation7 + $0xf8] sm:$0xff]  ;;  %v3246_v53 = vpack.c.bf16 %v278_v47, %v274_v46  ;;  %v280_v55 = vld [vmem:[#allocation7 + $0xc0] sm:$0xff] }
  0x45   :  { %2334 = vmatpush1.bf16.msra.mxu0 %v3228_v35  ;;  %v3248_v54 = vpack.c.bf16 %v285_v49, %v281_v48  ;;  %v284_v56 = vld [vmem:[#allocation7 + $0xe0] sm:$0xff]  ;;  %v282_v57 = vld [vmem:[#allocation7 + $0xd0] sm:$0xff]  ;;  %v3251_v58 = vpack.c.bf16 %v287_v52, %v283_v50  ;;  %v289_v60 = vld [vmem:[#allocation7 + $0x108] sm:$0xff] }
  0x46   :  { %2366 = vmatpush1.bf16.msra.mxu1 %v3232_v39  ;;  %2336 = vmatprep.subr.bf16.mxu0 %v3234_v40  ;;  %v286_v59 = vld [vmem:[#allocation7 + $0xf0] sm:$0xff]  ;;  %v293_v61 = vld [vmem:[#allocation7 + $0x128] sm:$0xff]  ;;  %v291_v62 = vld [vmem:[#allocation7 + $0x118] sm:$0xff]  ;;  %v3254_v1 = vpack.c.bf16 %v284_v56, %v280_v55 }
  0x47   :  { %2368 = vmatprep.subr.bf16.mxu1 %v3237_v44  ;;  %v295_v63 = vld [vmem:[#allocation7 + $0x138] sm:$0xff]  ;;  %v3258_v2 = vpack.c.bf16 %v286_v59, %v282_v57  ;;  %v3260_v3 = vpack.c.bf16 %v293_v61, %v289_v60  ;;  %v288_v4 = vld [vmem:[#allocation7 + $0x100] sm:$0xff]  ;;  %v290_v6 = vld [vmem:[#allocation7 + $0x110] sm:$0xff] }
  0x48   :  { %v292_v5 = vld [vmem:[#allocation7 + $0x120] sm:$0xff]  ;;  %v3263_v7 = vpack.c.bf16 %v295_v63, %v291_v62  ;;  %v294_v8 = vld [vmem:[#allocation7 + $0x130] sm:$0xff]  ;;  %v297_v9 = vld [vmem:[#allocation7 + $0x148] sm:$0xff] }
  0x49   :  { %2338 = vmatpush1.bf16.msra.mxu0 %v3242_v51  ;;  %v301_v10 = vld [vmem:[#allocation7 + $0x168] sm:$0xff]  ;;  %v299_v11 = vld [vmem:[#allocation7 + $0x158] sm:$0xff]  ;;  %v3266_v13 = vpack.c.bf16 %v292_v5, %v288_v4  ;;  %v296_v14 = vld [vmem:[#allocation7 + $0x140] sm:$0xff]  ;;  %v3270_v15 = vpack.c.bf16 %v294_v8, %v290_v6  ;;  %v75_v5 = vlaneseq }
  0x4a   :  { %2370 = vmatpush1.bf16.msra.mxu1 %v3246_v53  ;;  %2340 = vmatprep.subr.bf16.mxu0 %v3248_v54  ;;  %v303_v12 = vld [vmem:[#allocation7 + $0x178] sm:$0xff]  ;;  %v3272_v16 = vpack.c.bf16 %v301_v10, %v297_v9  ;;  %v300_v18 = vld [vmem:[#allocation7 + $0x160] sm:$0xff]  ;;  %v298_v19 = vld [vmem:[#allocation7 + $0x150] sm:$0xff] }
  0x4b   :  { %2372 = vmatprep.subr.bf16.mxu1 %v3251_v58  ;;  %v64_v20 = vld [vmem:[#allocation2 + $0x8] sm:$0xff]  ;;  %v3275_v23 = vpack.c.bf16 %v303_v12, %v299_v11  ;;  %v302_v24 = vld [vmem:[#allocation7 + $0x170] sm:$0xff]  ;;  %v305_v25 = vld [vmem:[#allocation7 + $0x188] sm:$0xff]  ;;  %v3281_v32 = vpack.c.bf16 %v300_v18, %v296_v14  ;;  %v76_v8 = vshrl.u32 %v75_v5, 7 }
  0x4c   :  { %v309_v27 = vld [vmem:[#allocation7 + $0x1a8] sm:$0xff]  ;;  %2292 = vmatmul.mubr.msk.f32.gmra.mrb[2].mxu0 %vm95_vm0, %v64_v20  ;;  %v307_v28 = vld [vmem:[#allocation7 + $0x198] sm:$0xff]  ;;  %2294 = vmatmul.mubr.msk.f32.gmra.mrb[2].mxu1 %vm95_vm0, %v64_v20  ;;  %v3286_v33 = vpack.c.bf16 %v302_v24, %v298_v19  ;;  %v304_v36 = vld [vmem:[#allocation7 + $0x180] sm:$0xff] }
  0x4d   :  { %2342 = vmatpush1.bf16.msra.mxu0 %v3254_v1  ;;  %v311_v29 = vld [vmem:[#allocation7 + $0x1b8] sm:$0xff]  ;;  %384 = vmatprep.mubr.f32.mxu0 %v3125_v0  ;;  %v3288_v34 = vpack.c.bf16 %v309_v27, %v305_v25  ;;  %v308_v37 = vld [vmem:[#allocation7 + $0x1a0] sm:$0xff]  ;;  %v306_v38 = vld [vmem:[#allocation7 + $0x190] sm:$0xff]  ;;  %v77_v9 = vsub.s32 0, %v76_v8  ;;  %v81_v11 = vsub.s32 1, %v76_v8  ;;  %v85_v12 = vsub.s32 2, %v76_v8 }
  0x4e   :  { %2374 = vmatpush1.bf16.msra.mxu1 %v3258_v2  ;;  %2344 = vmatprep.subr.bf16.mxu0 %v3260_v3  ;;  %v3291_v41 = vpack.c.bf16 %v311_v29, %v307_v28  ;;  %v310_v42 = vld [vmem:[#allocation7 + $0x1b0] sm:$0xff]  ;;  %v313_v43 = vld [vmem:[#allocation7 + $0x1c8] sm:$0xff]  ;;  %v315_v46 = vld [vmem:[#allocation7 + $0x1d8] sm:$0xff]  ;;  %v3294_v48 = vpack.c.bf16 %v308_v37, %v304_v36  ;;  %v89_v14 = vsub.s32 3, %v76_v8 }
  0x4f   :  { %2376 = vmatprep.subr.bf16.mxu1 %v3263_v7  ;;  %455 = vmatprep.mubr.f32.mxu1 %v3125_v0  ;;  %v317_v45 = vld [vmem:[#allocation7 + $0x1e8] sm:$0xff]  ;;  %v319_v47 = vld [vmem:[#allocation7 + $0x1f8] sm:$0xff]  ;;  %v3298_v49 = vpack.c.bf16 %v310_v42, %v306_v38  ;;  %v312_v52 = vld [vmem:[#allocation7 + $0x1c0] sm:$0xff] }
  0x50   :  { %v3300_v50 = vpack.c.bf16 %v317_v45, %v313_v43  ;;  %v316_v55 = vld [vmem:[#allocation7 + $0x1e0] sm:$0xff]  ;;  %v3303_v56 = vpack.c.bf16 %v319_v47, %v315_v46  ;;  %v314_v57 = vld [vmem:[#allocation7 + $0x1d0] sm:$0xff] }
  0x51   :  { %2346 = vmatpush1.bf16.msra.mxu0 %v3266_v13  ;;  %v318_v59 = vld [vmem:[#allocation7 + $0x1f0] sm:$0xff]  ;;  %v3306_v60 = vpack.c.bf16 %v316_v55, %v312_v52 }
  0x52   :  { %2378 = vmatpush1.bf16.msra.mxu1 %v3270_v15  ;;  %2348 = vmatprep.subr.bf16.mxu0 %v3272_v16  ;;  %v3310_v61 = vpack.c.bf16 %v318_v59, %v314_v57  ;;  %v73_v10 = vld [vmem:[%s3722_s3] sm:$0xf]  ;;  %s3126_s3 = smov [#allocation9]  }
  0x53   :  { %2380 = vmatprep.subr.bf16.mxu1 %v3275_v23  ;;  %v78_v18 = vrot.slane %v73_v10, %v77_v9  ;;  %v82_v19 = vrot.slane %v73_v10, %v81_v11  ;;  %v86_v20 = vrot.slane %v73_v10, %v85_v12  ;;  %v90_v24 = vrot.slane %v73_v10, %v89_v14  ;;  %s2264_s8 = sshll.u32 %s3126_s3, 4  ;;  %s2265_s8 = int_to_ptr.vmem [resolvable:$true] %s2264_s8 }
  0x54   :  { %s3044_s17 = scalar_lea.vmem %s2265_s8, 32  ;;  %p3049_p11 = scmp.lt.s32.totalorder %s2265_s8, %s2265_s8 }
  0x55   :  { %2350 = vmatpush1.bf16.msra.mxu0 %v3281_v32  ;;  %p3045_p10 = scmp.ne.s32.totalorder %s2265_s8, %s3044_s17  ;;  %p3050_p12 = scmp.lt.s32.totalorder %s3044_s17, %s3044_s17 }
  0x56   :  { %2382 = vmatpush1.bf16.msra.mxu1 %v3286_v33  ;;  %2352 = vmatprep.subr.bf16.mxu0 %v3288_v34 }
  0x57   :  { %2384 = vmatprep.subr.bf16.mxu1 %v3291_v41  ;;  %p3051_p13 = por %p3050_p12, %p3049_p11 }
  0x59   :  { %2354 = vmatpush1.bf16.msra.mxu0 %v3294_v48  ;;  %p3052_p0 = pnand %p3051_p13, %p3045_p10 }
  0x5a   :  { %2386 = vmatpush1.bf16.msra.mxu1 %v3298_v49  ;;  %2356 = vmatprep.subr.bf16.mxu0 %v3300_v50 }
  0x5b   :  { %2388 = vmatprep.subr.bf16.mxu1 %v3303_v56 }
  0x5d   :  { %2358 = vmatpush1.bf16.msra.mxu0 %v3306_v60 }
  0x5e   :  { %2390 = vmatpush1.bf16.msra.mxu1 %v3310_v61  ;;  %2392 = vmatprep.subr.bf16.mxu0 %v3211_v17 }
  0x5f   :  { %2424 = vmatprep.subr.bf16.mxu1 %v3213_v21 }
  0x60   :  { %385 = vmatmul.mubr.f32.vlgmr.msra.gmra.mrb[4].mxu0 %v3125_v0 }
  0x61   :  { %456 = vmatmul.mubr.f32.vlgmr.msra.gmra.mrb[4].mxu1 %v3125_v0  ;;  %2394 = vmatpush1.bf16.msra.mxu0 %v3215_v22 }
  0x62   :  { %2426 = vmatpush1.bf16.msra.mxu1 %v3218_v26  ;;  %2396 = vmatprep.subr.bf16.mxu0 %v3222_v30 }
  0x63   :  { %2428 = vmatprep.subr.bf16.mxu1 %v3224_v31  ;;  %619 = vmatprep.mubr.f32.mxu0 %v3125_v0 }
  0x64   :  { %690 = vmatprep.mubr.f32.mxu1 %v3125_v0 }
  0x65   :  { %2398 = vmatpush1.bf16.msra.mxu0 %v3228_v35 }
  0x66   :  { %2430 = vmatpush1.bf16.msra.mxu1 %v3232_v39  ;;  %2400 = vmatprep.subr.bf16.mxu0 %v3234_v40 }
  0x67   :  { %2432 = vmatprep.subr.bf16.mxu1 %v3237_v44 }
  0x69   :  { %2402 = vmatpush1.bf16.msra.mxu0 %v3242_v51 }
  0x6a   :  { %2434 = vmatpush1.bf16.msra.mxu1 %v3246_v53  ;;  %2404 = vmatprep.subr.bf16.mxu0 %v3248_v54 }
  0x6b   :  { %2436 = vmatprep.subr.bf16.mxu1 %v3251_v58 }
  0x6d   :  { %2406 = vmatpush1.bf16.msra.mxu0 %v3254_v1 }
  0x6e   :  { %2438 = vmatpush1.bf16.msra.mxu1 %v3258_v2  ;;  %2408 = vmatprep.subr.bf16.mxu0 %v3260_v3 }
  0x6f   :  { %2440 = vmatprep.subr.bf16.mxu1 %v3263_v7 }
  0x71   :  { %2410 = vmatpush1.bf16.msra.mxu0 %v3266_v13 }
  0x72   :  { %2442 = vmatpush1.bf16.msra.mxu1 %v3270_v15  ;;  %2412 = vmatprep.subr.bf16.mxu0 %v3272_v16 }
  0x73   :  { %2444 = vmatprep.subr.bf16.mxu1 %v3275_v23 }
  0x75   :  { %2414 = vmatpush1.bf16.msra.mxu0 %v3281_v32 }
  0x76   :  { %2446 = vmatpush1.bf16.msra.mxu1 %v3286_v33  ;;  %2416 = vmatprep.subr.bf16.mxu0 %v3288_v34 }
  0x77   :  { %2448 = vmatprep.subr.bf16.mxu1 %v3291_v41 }
  0x79   :  { %2418 = vmatpush1.bf16.msra.mxu0 %v3294_v48 }
  0x7a   :  { %2450 = vmatpush1.bf16.msra.mxu1 %v3298_v49  ;;  %2420 = vmatprep.subr.bf16.mxu0 %v3300_v50 }
  0x7b   :  { %2452 = vmatprep.subr.bf16.mxu1 %v3303_v56 }
  0x7d   :  { %2422 = vmatpush1.bf16.msra.mxu0 %v3306_v60 }
  0x7e   :  { %2454 = vmatpush1.bf16.msra.mxu1 %v3310_v61  ;;  %2456 = vmatprep.subr.bf16.mxu0 %v3211_v17 }
  0x7f   :  { %2488 = vmatprep.subr.bf16.mxu1 %v3213_v21 }
 0x113   :  { %v168_v62 = vpop.f32.mrb[0].mxu0 }
 0x114   :  { %v170_v63 = vpop.f32.mrb[1].mxu0  ;;  %v245_v4 = vpop.f32.mrb[0].mxu1  ;;  %v3364_v38 = vadd.f32 %v168_v62, %v78_v18 }
 0x115   :  { %v247_v6 = vpop.f32.mrb[1].mxu1  ;;  %v3366_v42 = vadd.f32 %v170_v63, %v82_v19  ;;  %v3373_v62 = vadd.f32 %v245_v4, %v86_v20 }
 0x116   :  { %v3370_v5 = vadd.f32 %v247_v6, %v90_v24 }
 0x11f   :  { %v174_v17 = vpop.f32.mrb[2].mxu0  ;;  %v251_v27 = vpop.f32.mrb[2].mxu1 }
 0x120   :  { %v3356_v21 = vadd.f32 %v174_v17, %v78_v18  ;;  %v176_v25 = vpop.f32.mrb[3].mxu0  ;;  %v3360_v29 = vadd.f32 %v251_v27, %v86_v20  ;;  %v253_v36 = vpop.f32.mrb[3].mxu1 }
 0x121   :  { %v3358_v28 = vadd.f32 %v176_v25, %v82_v19  ;;  %v3362_v37 = vadd.f32 %v253_v36, %v90_v24 }
 0x133   :  { %v386_v43 = vpop.f32.mrb[4].mxu0 }
 0x134   :  { %v462_v45 = vadd.f32 %v386_v43, %v3364_v38  ;;  %v457_v46 = vpop.f32.mrb[4].mxu1  ;;  %v388_v47 = vpop.f32.mrb[5].mxu0 }
 0x135   :  { %v463_v52 = vadd.f32 %v388_v47, %v3366_v42  ;;  %v459_v55 = vpop.f32.mrb[5].mxu1  ;;  %v464_v9 = vadd.f32 %v457_v46, %v3373_v62 }
 0x136   :  { %v2295_v57 = vmul.f32 -1.442695, %v462_v45  ;;  %v465_v8 = vadd.f32 %v459_v55, %v3370_v5 }
 0x137   :  { %v2296_v59 = vmul.f32 -1.442695, %v463_v52 }
 0x138   :  { %2850 = vpow2.f32 %v2295_v57  ;;  %v2297_v63 = vmul.f32 -1.442695, %v465_v8  ;;  %v999_v8 = vld [vmem:[#allocation7 + $0x28] sm:$0xff] }
 0x139   :  { %2852 = vpow2.f32 %v2296_v59  ;;  %v995_v59 = vld [vmem:[#allocation7 + $0x8] sm:$0xff] }
 0x13a   :  { %2854 = vpow2.f32 %v2297_v63  ;;  %v997_v63 = vld [vmem:[#allocation7 + $0x18] sm:$0xff] }
 0x13b   :  { %2856 = vtanh.f32 %v464_v9  ;;  %v3421_v9 = vpack.c.bf16 %v999_v8, %v995_v59  ;;  %v1029_v59 = vld [vmem:[#allocation7 + $0x118] sm:$0xff] }
 0x142   :  { %v2851_v10 = vpop.eup %2850 }
 0x143   :  { %v2853_v11 = vpop.eup %2852  ;;  %v469_v12 = vadd.f32 1.0, %v2851_v10  ;;  %v1001_v10 = vld [vmem:[#allocation7 + $0x38] sm:$0xff] }
 0x144   :  { %v475_v14 = vadd.f32 1.0, %v2853_v11  ;;  %v2855_v18 = vpop.eup %2854  ;;  %v994_v11 = vld [vmem:[#allocation7] sm:$0xff] }
 0x145   :  { %2858 = vrcp.f32 %v469_v12  ;;  %v2857_v19 = vpop.eup %2856  ;;  %v482_v25 = vadd.f32 1.0, %v2855_v18  ;;  %v998_v12 = vld [vmem:[#allocation7 + $0x20] sm:$0xff] }
 0x146   :  { %2860 = vrcp.f32 %v475_v14  ;;  %v3423_v14 = vpack.c.bf16 %v1001_v10, %v997_v63  ;;  %v3425_v18 = vpack.c.bf16 %v998_v12, %v994_v11  ;;  %v1033_v63 = vld [vmem:[#allocation7 + $0x138] sm:$0xff]  ;;  %v1026_v10 = vld [vmem:[#allocation7 + $0x100] sm:$0xff] }
 0x147   :  { %2862 = vrcp.f32 %v482_v25  ;;  %v1007_v25 = vld [vmem:[#allocation7 + $0x68] sm:$0xff]  ;;  %v1030_v11 = vld [vmem:[#allocation7 + $0x120] sm:$0xff]  ;;  %v3471_v12 = vpack.c.bf16 %v1033_v63, %v1029_v59 }
 0x14f   :  { %v2859_v6 = vpop.eup %2858 }
 0x150   :  { %v2861_v17 = vpop.eup %2860  ;;  %v486_v24 = vmul.f32 %v2859_v6, %v2857_v19  ;;  %v996_v19 = vld [vmem:[#allocation7 + $0x10] sm:$0xff] }
 0x151   :  { %v485_v27 = vmul.f32 0.0, %v2861_v17  ;;  %v2863_v20 = vpop.eup %2862  ;;  %v1000_v6 = vld [vmem:[#allocation7 + $0x30] sm:$0xff] }
 0x152   :  { %v3428_v17 = vpack.c.bf16 %v1000_v6, %v996_v19  ;;  %v3473_v19 = vpack.c.bf16 %v1030_v11, %v1026_v10  ;;  %v1028_v6 = vld [vmem:[#allocation7 + $0x110] sm:$0xff] }
 0x153   :  { %v3376_v4 = vadd.f32 %v486_v24, %v485_v27  ;;  %v1003_v24 = vld [vmem:[#allocation7 + $0x48] sm:$0xff]  ;;  %v1005_v27 = vld [vmem:[#allocation7 + $0x58] sm:$0xff] }
 0x155   :  { %2864 = vtanh.f32 %v3376_v4 }
 0x15f   :  { %v2865_v36 = vpop.eup %2864 }
 0x160   :  { %v489_v43 = vmul.f32 %v2865_v36, %v2863_v20  ;;  %v1009_v20 = vld [vmem:[#allocation7 + $0x78] sm:$0xff]  ;;  %v1002_v36 = vld [vmem:[#allocation7 + $0x40] sm:$0xff] }
 0x162   :  { %490 = vst [vmem:[#allocation8] sm:$0x3] %v489_v43  ;;  %620 = vmatmul.mubr.f32.vlgmr.msra.gmra.mrb[6].mxu0 %v489_v43  ;;  %691 = vmatmul.mubr.f32.vlgmr.msra.gmra.mrb[6].mxu1 %v489_v43  ;;  %v1006_v43 = vld [vmem:[#allocation7 + $0x60] sm:$0xff] }
 0x163   :  { %2458 = vmatpush1.bf16.msra.mxu0 %v3215_v22  ;;  %2490 = vmatpush1.bf16.msra.mxu1 %v3218_v26 }
 0x164   :  { %2460 = vmatprep.subr.bf16.mxu0 %v3222_v30  ;;  %2492 = vmatprep.subr.bf16.mxu1 %v3224_v31 }
 0x165   :  { %872 = vmatprep.mubr.f32.mxu0 %v3125_v0  ;;  %943 = vmatprep.mubr.f32.mxu1 %v3125_v0 }
 0x167   :  { %2462 = vmatpush1.bf16.msra.mxu0 %v3228_v35  ;;  %2494 = vmatpush1.bf16.msra.mxu1 %v3232_v39 }
 0x168   :  { %2464 = vmatprep.subr.bf16.mxu0 %v3234_v40  ;;  %2496 = vmatprep.subr.bf16.mxu1 %v3237_v44 }
 0x16b   :  { %2466 = vmatpush1.bf16.msra.mxu0 %v3242_v51  ;;  %2498 = vmatpush1.bf16.msra.mxu1 %v3246_v53 }
 0x16c   :  { %2468 = vmatprep.subr.bf16.mxu0 %v3248_v54  ;;  %2500 = vmatprep.subr.bf16.mxu1 %v3251_v58 }
 0x16f   :  { %2470 = vmatpush1.bf16.msra.mxu0 %v3254_v1  ;;  %2502 = vmatpush1.bf16.msra.mxu1 %v3258_v2 }
 0x170   :  { %2472 = vmatprep.subr.bf16.mxu0 %v3260_v3  ;;  %2504 = vmatprep.subr.bf16.mxu1 %v3263_v7 }
 0x173   :  { %2474 = vmatpush1.bf16.msra.mxu0 %v3266_v13  ;;  %2506 = vmatpush1.bf16.msra.mxu1 %v3270_v15 }
 0x174   :  { %2476 = vmatprep.subr.bf16.mxu0 %v3272_v16  ;;  %2508 = vmatprep.subr.bf16.mxu1 %v3275_v23 }
 0x177   :  { %2478 = vmatpush1.bf16.msra.mxu0 %v3281_v32  ;;  %2510 = vmatpush1.bf16.msra.mxu1 %v3286_v33 }
 0x178   :  { %2480 = vmatprep.subr.bf16.mxu0 %v3288_v34  ;;  %2512 = vmatprep.subr.bf16.mxu1 %v3291_v41  ;;  %v733_v34 = vrot.slane %v3376_v4, 6  ;;  %v3433_v4 = vpack.c.bf16 %v1007_v25, %v1003_v24  ;;  %v1032_v24 = vld [vmem:[#allocation7 + $0x130] sm:$0xff]  ;;  %v1035_v25 = vld [vmem:[#allocation7 + $0x148] sm:$0xff] }
 0x17b   :  { %2482 = vmatpush1.bf16.msra.mxu0 %v3294_v48  ;;  %2514 = vmatpush1.bf16.msra.mxu1 %v3298_v49 }
 0x17c   :  { %2484 = vmatprep.subr.bf16.mxu0 %v3300_v50  ;;  %2516 = vmatprep.subr.bf16.mxu1 %v3303_v56 }
 0x17f   :  { %2486 = vmatpush1.bf16.msra.mxu0 %v3306_v60  ;;  %2518 = vmatpush1.bf16.msra.mxu1 %v3310_v61 }
 0x180   :  { %2520 = vmatprep.subr.bf16.mxu0 %v3421_v9  ;;  %2552 = vmatprep.subr.bf16.mxu1 %v3423_v14 }
 0x235   :  { %v621_v22 = vpop.f32.mrb[6].mxu0  ;;  %v692_v26 = vpop.f32.mrb[6].mxu1 }
 0x236   :  { %v701_v30 = vrot.slane %v621_v22, 6  ;;  %v623_v31 = vpop.f32.mrb[7].mxu0  ;;  %v694_v35 = vpop.f32.mrb[7].mxu1  ;;  %v703_v1 = vrot.slane %v692_v26, 6  ;;  %v3435_v22 = vpack.c.bf16 %v1009_v20, %v1005_v27  ;;  %v3437_v26 = vpack.c.bf16 %v1006_v43, %v1002_v36  ;;  %v1039_v20 = vld [vmem:[#allocation7 + $0x168] sm:$0xff]  ;;  %v1037_v36 = vld [vmem:[#allocation7 + $0x158] sm:$0xff] }
 0x237   :  { %v702_v39 = vrot.slane %v623_v31, 6  ;;  %v704_v54 = vrot.slane %v694_v35, 6  ;;  %v1008_v31 = vld [vmem:[#allocation7 + $0x70] sm:$0xff]  ;;  %v3476_v27 = vpack.c.bf16 %v1032_v24, %v1028_v6  ;;  %v1041_v43 = vld [vmem:[#allocation7 + $0x178] sm:$0xff] }
 0x238   :  { %v709_v40 = vadd.f32 %v701_v30, %v3364_v38  ;;  %v711_v3 = vadd.f32 %v703_v1, %v3373_v62  ;;  %v1004_v30 = vld [vmem:[#allocation7 + $0x50] sm:$0xff] }
 0x239   :  { %v710_v44 = vadd.f32 %v702_v39, %v3366_v42  ;;  %v712_v58 = vadd.f32 %v704_v54, %v3370_v5  ;;  %v3440_v35 = vpack.c.bf16 %v1008_v31, %v1004_v30  ;;  %v1011_v39 = vld [vmem:[#allocation7 + $0x88] sm:$0xff]  ;;  %v1010_v54 = vld [vmem:[#allocation7 + $0x80] sm:$0xff]  ;;  %v3480_v30 = vpack.c.bf16 %v1039_v20, %v1035_v25 }
 0x23a   :  { %v2298_v51 = vmul.f32 -1.442695, %v709_v40  ;;  %v1015_v40 = vld [vmem:[#allocation7 + $0xa8] sm:$0xff]  ;;  %v3482_v31 = vpack.c.bf16 %v1041_v43, %v1037_v36 }
 0x23b   :  { %v2299_v53 = vmul.f32 -1.442695, %v710_v44  ;;  %v2300_v2 = vmul.f32 -1.442695, %v712_v58  ;;  %v1013_v44 = vld [vmem:[#allocation7 + $0x98] sm:$0xff]  ;;  %v1014_v58 = vld [vmem:[#allocation7 + $0xa0] sm:$0xff] }
 0x23c   :  { %2866 = vpow2.f32 %v2298_v51  ;;  %v3445_v51 = vpack.c.bf16 %v1015_v40, %v1011_v39  ;;  %v1034_v39 = vld [vmem:[#allocation7 + $0x140] sm:$0xff] }
 0x23d   :  { %2868 = vpow2.f32 %v2299_v53  ;;  %v1017_v53 = vld [vmem:[#allocation7 + $0xb8] sm:$0xff]  ;;  %v1038_v40 = vld [vmem:[#allocation7 + $0x160] sm:$0xff] }
 0x23e   :  { %2870 = vpow2.f32 %v2300_v2  ;;  %v3447_v1 = vpack.c.bf16 %v1017_v53, %v1013_v44  ;;  %v3449_v2 = vpack.c.bf16 %v1014_v58, %v1010_v54  ;;  %v1036_v44 = vld [vmem:[#allocation7 + $0x150] sm:$0xff]  ;;  %v3485_v53 = vpack.c.bf16 %v1038_v40, %v1034_v39  ;;  %v1043_v58 = vld [vmem:[#allocation7 + $0x188] sm:$0xff] }
 0x23f   :  { %2872 = vtanh.f32 %v711_v3  ;;  %v1012_v3 = vld [vmem:[#allocation7 + $0x90] sm:$0xff] }
 0x240   :  { %v1040_v54 = vld [vmem:[#allocation7 + $0x170] sm:$0xff] }
 0x246   :  { %v2867_v7 = vpop.eup %2866 }
 0x247   :  { %v2869_v13 = vpop.eup %2868  ;;  %v716_v15 = vadd.f32 1.0, %v2867_v7  ;;  %v1016_v7 = vld [vmem:[#allocation7 + $0xb0] sm:$0xff] }
 0x248   :  { %v722_v16 = vadd.f32 1.0, %v2869_v13  ;;  %v2871_v23 = vpop.eup %2870  ;;  %v3452_v13 = vpack.c.bf16 %v1016_v7, %v1012_v3  ;;  %v1047_v3 = vld [vmem:[#allocation7 + $0x1a8] sm:$0xff]  ;;  %v3489_v7 = vpack.c.bf16 %v1040_v54, %v1036_v44 }
 0x249   :  { %2874 = vrcp.f32 %v716_v15  ;;  %v2873_v32 = vpop.eup %2872  ;;  %v729_v49 = vadd.f32 1.0, %v2871_v23  ;;  %v1019_v15 = vld [vmem:[#allocation7 + $0xc8] sm:$0xff]  ;;  %v1021_v23 = vld [vmem:[#allocation7 + $0xd8] sm:$0xff] }
 0x24a   :  { %2876 = vrcp.f32 %v722_v16  ;;  %v1023_v16 = vld [vmem:[#allocation7 + $0xe8] sm:$0xff] }
 0x24b   :  { %2878 = vrcp.f32 %v729_v49 }
 0x253   :  { %v2875_v33 = vpop.eup %2874 }
 0x254   :  { %v2877_v41 = vpop.eup %2876  ;;  %v736_v48 = vmul.f32 %v2875_v33, %v2873_v32  ;;  %v3457_v32 = vpack.c.bf16 %v1023_v16, %v1019_v15  ;;  %v1025_v33 = vld [vmem:[#allocation7 + $0xf8] sm:$0xff]  ;;  %v3491_v15 = vpack.c.bf16 %v1047_v3, %v1043_v58 }
 0x255   :  { %v735_v45 = vmul.f32 %v2877_v41, %v733_v34  ;;  %v2879_v47 = vpop.eup %2878  ;;  %v1018_v34 = vld [vmem:[#allocation7 + $0xc0] sm:$0xff]  ;;  %v1045_v16 = vld [vmem:[#allocation7 + $0x198] sm:$0xff] }
 0x256   :  { %v1022_v41 = vld [vmem:[#allocation7 + $0xe0] sm:$0xff] }
 0x257   :  { %v3416_v46 = vadd.f32 %v736_v48, %v735_v45  ;;  %v3459_v48 = vpack.c.bf16 %v1025_v33, %v1021_v23  ;;  %v3461_v49 = vpack.c.bf16 %v1022_v41, %v1018_v34  ;;  %v1020_v45 = vld [vmem:[#allocation7 + $0xd0] sm:$0xff]  ;;  %v1049_v23 = vld [vmem:[#allocation7 + $0x1b8] sm:$0xff]  ;;  %v1042_v33 = vld [vmem:[#allocation7 + $0x180] sm:$0xff] }
 0x258   :  { %v3493_v34 = vpack.c.bf16 %v1049_v23, %v1045_v16  ;;  %v1046_v41 = vld [vmem:[#allocation7 + $0x1a0] sm:$0xff] }
 0x259   :  { %2880 = vtanh.f32 %v3416_v46 }
 0x263   :  { %v2881_v52 = vpop.eup %2880 }
 0x264   :  { %v739_v55 = vmul.f32 %v2881_v52, %v2879_v47  ;;  %v1024_v47 = vld [vmem:[#allocation7 + $0xf0] sm:$0xff] }
 0x265   :  { %v3464_v52 = vpack.c.bf16 %v1024_v47, %v1020_v45  ;;  %v1044_v45 = vld [vmem:[#allocation7 + $0x190] sm:$0xff] }
 0x266   :  { %740 = vst [vmem:[#allocation8] sm:$0xc] %v739_v55  ;;  %v806_v57 = vrot.slane %v739_v55, 2  ;;  %v1027_v55 = vld [vmem:[#allocation7 + $0x108] sm:$0xff]  ;;  %v1048_v47 = vld [vmem:[#allocation7 + $0x1b0] sm:$0xff] }
 0x268   :  { %873 = vmatmul.mubr.f32.vlgmr.msra.gmra.mrb[8].mxu0 %v806_v57  ;;  %944 = vmatmul.mubr.f32.vlgmr.msra.gmra.mrb[8].mxu1 %v806_v57  ;;  %v1031_v57 = vld [vmem:[#allocation7 + $0x128] sm:$0xff] }
 0x269   :  { %1125 = vmatprep.mubr.f32.mxu0 %v3125_v0  ;;  %1196 = vmatprep.mubr.f32.mxu1 %v3125_v0  ;;  %v3469_v8 = vpack.c.bf16 %v1031_v57, %v1027_v55  ;;  %v3496_v55 = vpack.c.bf16 %v1046_v41, %v1042_v33  ;;  %v3500_v57 = vpack.c.bf16 %v1048_v47, %v1044_v45  ;;  %v986_v33 = vrot.slane %v3416_v46, 6  ;;  %v1304_v46 = vld [vmem:[#allocation7 + $0x1c8] sm:$0xff] }
 0x26a   :  { %2522 = vmatpush1.bf16.msra.mxu0 %v3425_v18  ;;  %2554 = vmatpush1.bf16.msra.mxu1 %v3428_v17 }
 0x26b   :  { %2524 = vmatprep.subr.bf16.mxu0 %v3433_v4  ;;  %2556 = vmatprep.subr.bf16.mxu1 %v3435_v22 }
 0x26e   :  { %2526 = vmatpush1.bf16.msra.mxu0 %v3437_v26  ;;  %2558 = vmatpush1.bf16.msra.mxu1 %v3440_v35 }
 0x26f   :  { %2528 = vmatprep.subr.bf16.mxu0 %v3445_v51  ;;  %2560 = vmatprep.subr.bf16.mxu1 %v3447_v1 }
 0x272   :  { %2530 = vmatpush1.bf16.msra.mxu0 %v3449_v2  ;;  %2562 = vmatpush1.bf16.msra.mxu1 %v3452_v13 }
 0x273   :  { %2532 = vmatprep.subr.bf16.mxu0 %v3457_v32  ;;  %2564 = vmatprep.subr.bf16.mxu1 %v3459_v48 }
 0x276   :  { %2534 = vmatpush1.bf16.msra.mxu0 %v3461_v49  ;;  %2566 = vmatpush1.bf16.msra.mxu1 %v3464_v52 }
 0x277   :  { %2536 = vmatprep.subr.bf16.mxu0 %v3469_v8  ;;  %2568 = vmatprep.subr.bf16.mxu1 %v3471_v12 }
 0x27a   :  { %2538 = vmatpush1.bf16.msra.mxu0 %v3473_v19  ;;  %2570 = vmatpush1.bf16.msra.mxu1 %v3476_v27 }
 0x27b   :  { %2540 = vmatprep.subr.bf16.mxu0 %v3480_v30  ;;  %2572 = vmatprep.subr.bf16.mxu1 %v3482_v31 }
 0x27e   :  { %2542 = vmatpush1.bf16.msra.mxu0 %v3485_v53  ;;  %2574 = vmatpush1.bf16.msra.mxu1 %v3489_v7 }
 0x27f   :  { %2544 = vmatprep.subr.bf16.mxu0 %v3491_v15  ;;  %2576 = vmatprep.subr.bf16.mxu1 %v3493_v34 }
 0x282   :  { %2546 = vmatpush1.bf16.msra.mxu0 %v3496_v55  ;;  %2578 = vmatpush1.bf16.msra.mxu1 %v3500_v57 }
 0x283   :  { %2548 = vmatprep.subr.bf16.mxu0 %v3300_v50  ;;  %2580 = vmatprep.subr.bf16.mxu1 %v3303_v56 }
 0x286   :  { %2550 = vmatpush1.bf16.msra.mxu0 %v3306_v60  ;;  %2582 = vmatpush1.bf16.msra.mxu1 %v3310_v61 }
 0x287   :  { %2584 = vmatprep.subr.bf16.mxu0 %v3421_v9  ;;  %2616 = vmatprep.subr.bf16.mxu1 %v3423_v14 }
 0x33b   :  { %v874_v59 = vpop.f32.mrb[8].mxu0  ;;  %v945_v63 = vpop.f32.mrb[8].mxu1 }
 0x33c   :  { %v954_v10 = vrot.slane %v874_v59, 4  ;;  %v876_v11 = vpop.f32.mrb[9].mxu0  ;;  %v947_v6 = vpop.f32.mrb[9].mxu1  ;;  %v956_v61 = vrot.slane %v945_v63, 4 }
 0x33d   :  { %v955_v24 = vrot.slane %v876_v11, 4  ;;  %v957_v36 = vrot.slane %v947_v6, 4 }
 0x33e   :  { %v962_v25 = vadd.f32 %v954_v10, %v3364_v38  ;;  %v964_v39 = vadd.f32 %v956_v61, %v3373_v62 }
 0x33f   :  { %v963_v50 = vadd.f32 %v955_v24, %v3366_v42  ;;  %v965_v60 = vadd.f32 %v957_v36, %v3370_v5  ;;  %v1303_v36 = vld [vmem:[#allocation7 + $0x1c0] sm:$0xff] }
 0x340   :  { %v2301_v20 = vmul.f32 -1.442695, %v962_v25  ;;  %v1308_v25 = vld [vmem:[#allocation7 + $0x1e8] sm:$0xff] }
 0x341   :  { %v2302_v56 = vmul.f32 -1.442695, %v963_v50  ;;  %v2303_v43 = vmul.f32 -1.442695, %v965_v60  ;;  %v1306_v50 = vld [vmem:[#allocation7 + $0x1d8] sm:$0xff]  ;;  %v1307_v60 = vld [vmem:[#allocation7 + $0x1e0] sm:$0xff] }
 0x342   :  { %2882 = vpow2.f32 %v2301_v20  ;;  %v3547_v20 = vpack.c.bf16 %v1308_v25, %v1304_v46 }
 0x343   :  { %2884 = vpow2.f32 %v2302_v56  ;;  %v1310_v56 = vld [vmem:[#allocation7 + $0x1f8] sm:$0xff] }
 0x344   :  { %2886 = vpow2.f32 %v2303_v43  ;;  %v3549_v61 = vpack.c.bf16 %v1310_v56, %v1306_v50  ;;  %v3551_v43 = vpack.c.bf16 %v1307_v60, %v1303_v36 }
 0x345   :  { %2888 = vtanh.f32 %v964_v39  ;;  %v1305_v39 = vld [vmem:[#allocation7 + $0x1d0] sm:$0xff] }
 0x34c   :  { %v2883_v40 = vpop.eup %2882 }
 0x34d   :  { %v2885_v44 = vpop.eup %2884  ;;  %v969_v54 = vadd.f32 1.0, %v2883_v40  ;;  %v1309_v40 = vld [vmem:[#allocation7 + $0x1f0] sm:$0xff] }
 0x34e   :  { %v975_v58 = vadd.f32 1.0, %v2885_v44  ;;  %v2887_v3 = vpop.eup %2886  ;;  %v3554_v44 = vpack.c.bf16 %v1309_v40, %v1305_v39 }
 0x34f   :  { %2890 = vrcp.f32 %v969_v54  ;;  %v2889_v16 = vpop.eup %2888  ;;  %v982_v47 = vadd.f32 1.0, %v2887_v3 }
 0x350   :  { %2892 = vrcp.f32 %v975_v58 }
 0x351   :  { %2894 = vrcp.f32 %v982_v47 }
 0x359   :  { %v2891_v23 = vpop.eup %2890 }
 0x35a   :  { %v2893_v41 = vpop.eup %2892  ;;  %v989_v45 = vmul.f32 %v2891_v23, %v2889_v16 }
 0x35b   :  { %v988_v59 = vmul.f32 %v2893_v41, %v986_v33  ;;  %v2895_v10 = vpop.eup %2894 }
 0x35d   :  { %v3516_v63 = vadd.f32 %v989_v45, %v988_v59 }
 0x35f   :  { %2896 = vtanh.f32 %v3516_v63  ;;  %v1239_v39 = vrot.slane %v3516_v63, 6 }
 0x369   :  { %v2897_v11 = vpop.eup %2896 }
 0x36a   :  { %v992_v6 = vmul.f32 %v2897_v11, %v2895_v10 }
 0x36c   :  { %993 = vst [vmem:[#allocation8] sm:$0x30] %v992_v6  ;;  %v1059_v24 = vrot.slane %v992_v6, 4 }
 0x36e   :  { %1126 = vmatmul.mubr.f32.vlgmr.msra.gmra.mrb[10].mxu0 %v1059_v24  ;;  %1197 = vmatmul.mubr.f32.vlgmr.msra.gmra.mrb[10].mxu1 %v1059_v24 }
 0x36f   :  { %2586 = vmatpush1.bf16.msra.mxu0 %v3425_v18  ;;  %2618 = vmatpush1.bf16.msra.mxu1 %v3428_v17 }
 0x370   :  { %2588 = vmatprep.subr.bf16.mxu0 %v3433_v4  ;;  %2620 = vmatprep.subr.bf16.mxu1 %v3435_v22 }
 0x371   :  { %1378 = vmatprep.mubr.f32.mxu0 %v3125_v0  ;;  %1449 = vmatprep.mubr.f32.mxu1 %v3125_v0 }
 0x373   :  { %2590 = vmatpush1.bf16.msra.mxu0 %v3437_v26  ;;  %2622 = vmatpush1.bf16.msra.mxu1 %v3440_v35 }
 0x374   :  { %2592 = vmatprep.subr.bf16.mxu0 %v3445_v51  ;;  %2624 = vmatprep.subr.bf16.mxu1 %v3447_v1 }
 0x377   :  { %2594 = vmatpush1.bf16.msra.mxu0 %v3449_v2  ;;  %2626 = vmatpush1.bf16.msra.mxu1 %v3452_v13 }
 0x378   :  { %2596 = vmatprep.subr.bf16.mxu0 %v3457_v32  ;;  %2628 = vmatprep.subr.bf16.mxu1 %v3459_v48 }
 0x37b   :  { %2598 = vmatpush1.bf16.msra.mxu0 %v3461_v49  ;;  %2630 = vmatpush1.bf16.msra.mxu1 %v3464_v52 }
 0x37c   :  { %2600 = vmatprep.subr.bf16.mxu0 %v3469_v8  ;;  %2632 = vmatprep.subr.bf16.mxu1 %v3471_v12 }
 0x37f   :  { %2602 = vmatpush1.bf16.msra.mxu0 %v3473_v19  ;;  %2634 = vmatpush1.bf16.msra.mxu1 %v3476_v27 }
 0x380   :  { %2604 = vmatprep.subr.bf16.mxu0 %v3480_v30  ;;  %2636 = vmatprep.subr.bf16.mxu1 %v3482_v31 }
 0x383   :  { %2606 = vmatpush1.bf16.msra.mxu0 %v3485_v53  ;;  %2638 = vmatpush1.bf16.msra.mxu1 %v3489_v7 }
 0x384   :  { %2608 = vmatprep.subr.bf16.mxu0 %v3491_v15  ;;  %2640 = vmatprep.subr.bf16.mxu1 %v3493_v34 }
 0x387   :  { %2610 = vmatpush1.bf16.msra.mxu0 %v3496_v55  ;;  %2642 = vmatpush1.bf16.msra.mxu1 %v3500_v57 }
 0x388   :  { %2612 = vmatprep.subr.bf16.mxu0 %v3547_v20  ;;  %2644 = vmatprep.subr.bf16.mxu1 %v3549_v61 }
 0x38b   :  { %2614 = vmatpush1.bf16.msra.mxu0 %v3551_v43  ;;  %2646 = vmatpush1.bf16.msra.mxu1 %v3554_v44 }
 0x38c   :  { %2648 = vmatprep.subr.bf16.mxu0 %v3421_v9  ;;  %2680 = vmatprep.subr.bf16.mxu1 %v3423_v14 }
 0x441   :  { %v1127_v54 = vpop.f32.mrb[10].mxu0  ;;  %v1198_v58 = vpop.f32.mrb[10].mxu1 }
 0x442   :  { %v1207_v3 = vrot.slane %v1127_v54, 2  ;;  %v1129_v16 = vpop.f32.mrb[11].mxu0  ;;  %v1200_v23 = vpop.f32.mrb[11].mxu1  ;;  %v1209_v6 = vrot.slane %v1198_v58, 2 }
 0x443   :  { %v1208_v33 = vrot.slane %v1129_v16, 2  ;;  %v1210_v10 = vrot.slane %v1200_v23, 2 }
 0x444   :  { %v1215_v41 = vadd.f32 %v1207_v3, %v3364_v38  ;;  %v1217_v46 = vadd.f32 %v1209_v6, %v3373_v62 }
 0x445   :  { %v1216_v45 = vadd.f32 %v1208_v33, %v3366_v42  ;;  %v1218_v11 = vadd.f32 %v1210_v10, %v3370_v5 }
 0x446   :  { %v2304_v47 = vmul.f32 -1.442695, %v1215_v41 }
 0x447   :  { %v2305_v59 = vmul.f32 -1.442695, %v1216_v45  ;;  %v2306_v24 = vmul.f32 -1.442695, %v1218_v11 }
 0x448   :  { %2898 = vpow2.f32 %v2304_v47 }
 0x449   :  { %2900 = vpow2.f32 %v2305_v59 }
 0x44a   :  { %2902 = vpow2.f32 %v2306_v24 }
 0x44b   :  { %2904 = vtanh.f32 %v1217_v46 }
 0x452   :  { %v2899_v25 = vpop.eup %2898 }
 0x453   :  { %v2901_v50 = vpop.eup %2900  ;;  %v1222_v56 = vadd.f32 1.0, %v2899_v25 }
 0x454   :  { %v1228_v36 = vadd.f32 1.0, %v2901_v50  ;;  %v2903_v38 = vpop.eup %2902 }
 0x455   :  { %2906 = vrcp.f32 %v1222_v56  ;;  %v2905_v42 = vpop.eup %2904  ;;  %v1235_v5 = vadd.f32 1.0, %v2903_v38 }
 0x456   :  { %2908 = vrcp.f32 %v1228_v36 }
 0x457   :  { %2910 = vrcp.f32 %v1235_v5 }
 0x45f   :  { %v2907_v60 = vpop.eup %2906 }
 0x460   :  { %v2909_v40 = vpop.eup %2908  ;;  %v1242_v54 = vmul.f32 %v2907_v60, %v2905_v42 }
 0x461   :  { %v1241_v58 = vmul.f32 %v2909_v40, %v1239_v39  ;;  %v2911_v62 = vpop.eup %2910 }
 0x463   :  { %v3566_v3 = vadd.f32 %v1242_v54, %v1241_v58 }
 0x465   :  { %2912 = vtanh.f32 %v3566_v3  ;;  %v1480_v60 = vrot.slane %v3566_v3, 6 }
 0x46f   :  { %v2913_v16 = vpop.eup %2912 }
 0x470   :  { %v1245_v23 = vmul.f32 %v2913_v16, %v2911_v62 }
 0x472   :  { %1246 = vst [vmem:[#allocation8] sm:$0xc0] %v1245_v23  ;;  %v1312_v33 = vrot.slane %v1245_v23, 6 }
 0x474   :  { %1379 = vmatmul.mubr.f32.vlgmr.msra.gmra.mrb[12].mxu0 %v1312_v33  ;;  %1450 = vmatmul.mubr.f32.vlgmr.msra.gmra.mrb[12].mxu1 %v1312_v33 }
 0x475   :  { %2650 = vmatpush1.bf16.msra.mxu0 %v3425_v18  ;;  %2682 = vmatpush1.bf16.msra.mxu1 %v3428_v17 }
 0x476   :  { %2652 = vmatprep.subr.bf16.mxu0 %v3433_v4  ;;  %2684 = vmatprep.subr.bf16.mxu1 %v3435_v22 }
 0x477   :  { %1616 = vmatprep.mubr.f32.mxu0 %v3125_v0  ;;  %1687 = vmatprep.mubr.f32.mxu1 %v3125_v0 }
 0x479   :  { %2654 = vmatpush1.bf16.msra.mxu0 %v3437_v26  ;;  %2686 = vmatpush1.bf16.msra.mxu1 %v3440_v35 }
 0x47a   :  { %2656 = vmatprep.subr.bf16.mxu0 %v3445_v51  ;;  %2688 = vmatprep.subr.bf16.mxu1 %v3447_v1 }
 0x47d   :  { %2658 = vmatpush1.bf16.msra.mxu0 %v3449_v2  ;;  %2690 = vmatpush1.bf16.msra.mxu1 %v3452_v13 }
 0x47e   :  { %2660 = vmatprep.subr.bf16.mxu0 %v3457_v32  ;;  %2692 = vmatprep.subr.bf16.mxu1 %v3459_v48 }
 0x481   :  { %2662 = vmatpush1.bf16.msra.mxu0 %v3461_v49  ;;  %2694 = vmatpush1.bf16.msra.mxu1 %v3464_v52 }
 0x482   :  { %2664 = vmatprep.subr.bf16.mxu0 %v3469_v8  ;;  %2696 = vmatprep.subr.bf16.mxu1 %v3471_v12 }
 0x485   :  { %2666 = vmatpush1.bf16.msra.mxu0 %v3473_v19  ;;  %2698 = vmatpush1.bf16.msra.mxu1 %v3476_v27 }
 0x486   :  { %2668 = vmatprep.subr.bf16.mxu0 %v3480_v30  ;;  %2700 = vmatprep.subr.bf16.mxu1 %v3482_v31 }
 0x489   :  { %2670 = vmatpush1.bf16.msra.mxu0 %v3485_v53  ;;  %2702 = vmatpush1.bf16.msra.mxu1 %v3489_v7 }
 0x48a   :  { %2672 = vmatprep.subr.bf16.mxu0 %v3491_v15  ;;  %2704 = vmatprep.subr.bf16.mxu1 %v3493_v34 }
 0x48d   :  { %2674 = vmatpush1.bf16.msra.mxu0 %v3496_v55  ;;  %2706 = vmatpush1.bf16.msra.mxu1 %v3500_v57 }
 0x48e   :  { %2676 = vmatprep.subr.bf16.mxu0 %v3547_v20  ;;  %2708 = vmatprep.subr.bf16.mxu1 %v3549_v61 }
 0x491   :  { %2678 = vmatpush1.bf16.msra.mxu0 %v3551_v43  ;;  %2710 = vmatpush1.bf16.msra.mxu1 %v3554_v44 }
 0x492   :  { %2712 = vmatprep.subr.bf16.mxu0 %v3421_v9  ;;  %2744 = vmatprep.subr.bf16.mxu1 %v3423_v14 }
 0x547   :  { %v1380_v63 = vpop.f32.mrb[12].mxu0  ;;  %v1451_v41 = vpop.f32.mrb[12].mxu1 }
 0x548   :  { %v1456_v45 = vadd.f32 %v1380_v63, %v3356_v21  ;;  %v1382_v47 = vpop.f32.mrb[13].mxu0  ;;  %v1453_v59 = vpop.f32.mrb[13].mxu1  ;;  %v1458_v25 = vadd.f32 %v1451_v41, %v3360_v29 }
 0x549   :  { %v1457_v10 = vadd.f32 %v1382_v47, %v3358_v28  ;;  %v1459_v24 = vadd.f32 %v1453_v59, %v3362_v37  ;;  %v1992_v59 = vld [vmem:[#allocation7 + $0x8] sm:$0xff] }
 0x54a   :  { %v2307_v11 = vmul.f32 -1.442695, %v1456_v45 }
 0x54b   :  { %v2308_v6 = vmul.f32 -1.442695, %v1457_v10  ;;  %v2309_v46 = vmul.f32 -1.442695, %v1459_v24  ;;  %v1996_v10 = vld [vmem:[#allocation7 + $0x28] sm:$0xff]  ;;  %v1998_v24 = vld [vmem:[#allocation7 + $0x38] sm:$0xff] }
 0x54c   :  { %2914 = vpow2.f32 %v2307_v11  ;;  %v1994_v11 = vld [vmem:[#allocation7 + $0x18] sm:$0xff] }
 0x54d   :  { %2916 = vpow2.f32 %v2308_v6  ;;  %v2775_v6 = vpack.c.bf16 %v1996_v10, %v1992_v59 }
 0x54e   :  { %2918 = vpow2.f32 %v2309_v46  ;;  %v1991_v46 = vld [vmem:[#allocation7] sm:$0xff] }
 0x54f   :  { %2920 = vtanh.f32 %v1458_v25  ;;  %v1995_v25 = vld [vmem:[#allocation7 + $0x20] sm:$0xff] }
 0x556   :  { %v2915_v9 = vpop.eup %2914 }
 0x557   :  { %v2917_v50 = vpop.eup %2916  ;;  %v1463_v14 = vadd.f32 1.0, %v2915_v9  ;;  %v2807_v9 = vpack.c.bf16 %v1998_v24, %v1994_v11  ;;  %v2025_v11 = vld [vmem:[#allocation7 + $0x110] sm:$0xff]  ;;  %v2032_v24 = vld [vmem:[#allocation7 + $0x148] sm:$0xff] }
 0x558   :  { %v1469_v56 = vadd.f32 1.0, %v2917_v50  ;;  %v2919_v36 = vpop.eup %2918  ;;  %v2777_v50 = vpack.c.bf16 %v1995_v25, %v1991_v46  ;;  %v2036_v25 = vld [vmem:[#allocation7 + $0x168] sm:$0xff] }
 0x559   :  { %2922 = vrcp.f32 %v1463_v14  ;;  %v2921_v38 = vpop.eup %2920  ;;  %v1476_v54 = vadd.f32 1.0, %v2919_v36  ;;  %v1993_v14 = vld [vmem:[#allocation7 + $0x10] sm:$0xff] }
 0x55a   :  { %2924 = vrcp.f32 %v1469_v56  ;;  %v1997_v56 = vld [vmem:[#allocation7 + $0x30] sm:$0xff] }
 0x55b   :  { %2926 = vrcp.f32 %v1476_v54  ;;  %v2809_v36 = vpack.c.bf16 %v1997_v56, %v1993_v14  ;;  %v2003_v54 = vld [vmem:[#allocation7 + $0x60] sm:$0xff]  ;;  %v2795_v14 = vpack.c.bf16 %v2036_v25, %v2032_v24 }
 0x563   :  { %v2923_v42 = vpop.eup %2922 }
 0x564   :  { %v2925_v39 = vpop.eup %2924  ;;  %v1483_v40 = vmul.f32 %v2923_v42, %v2921_v38  ;;  %v2000_v38 = vld [vmem:[#allocation7 + $0x48] sm:$0xff] }
 0x565   :  { %v1482_v5 = vmul.f32 %v2925_v39, %v1480_v60  ;;  %v2927_v62 = vpop.eup %2926  ;;  %v2004_v42 = vld [vmem:[#allocation7 + $0x68] sm:$0xff]  ;;  %v2002_v60 = vld [vmem:[#allocation7 + $0x58] sm:$0xff] }
 0x566   :  { %v2006_v39 = vld [vmem:[#allocation7 + $0x78] sm:$0xff] }
 0x567   :  { %v3608_v58 = vadd.f32 %v1483_v40, %v1482_v5  ;;  %v1999_v40 = vld [vmem:[#allocation7 + $0x40] sm:$0xff]  ;;  %v2811_v5 = vpack.c.bf16 %v2006_v39, %v2002_v60  ;;  %v2040_v39 = vld [vmem:[#allocation7 + $0x188] sm:$0xff] }
 0x569   :  { %2928 = vtanh.f32 %v3608_v58 }
 0x573   :  { %v2929_v16 = vpop.eup %2928 }
 0x574   :  { %v1486_v23 = vmul.f32 %v2929_v16, %v2927_v62  ;;  %v2001_v62 = vld [vmem:[#allocation7 + $0x50] sm:$0xff] }
 0x575   :  { %v2005_v16 = vld [vmem:[#allocation7 + $0x70] sm:$0xff] }
 0x576   :  { %1487 = vst [vmem:[#allocation8 + $0x8] sm:$0x3] %v1486_v23  ;;  %1617 = vmatmul.mubr.f32.vlgmr.msra.gmra.mrb[14].mxu0 %v1486_v23  ;;  %1688 = vmatmul.mubr.f32.vlgmr.msra.gmra.mrb[14].mxu1 %v1486_v23  ;;  %v2813_v23 = vpack.c.bf16 %v2005_v16, %v2001_v62  ;;  %v2046_v62 = vld [vmem:[#allocation7 + $0x1b8] sm:$0xff]  ;;  %v2039_v16 = vld [vmem:[#allocation7 + $0x180] sm:$0xff] }
 0x577   :  { %2714 = vmatpush1.bf16.msra.mxu0 %v3425_v18  ;;  %2746 = vmatpush1.bf16.msra.mxu1 %v3428_v17 }
 0x578   :  { %2716 = vmatprep.subr.bf16.mxu0 %v3433_v4  ;;  %2748 = vmatprep.subr.bf16.mxu1 %v3435_v22 }
 0x579   :  { %1869 = vmatprep.mubr.f32.mxu0 %v3125_v0  ;;  %1940 = vmatprep.mubr.f32.mxu1 %v3125_v0 }
 0x57b   :  { %2718 = vmatpush1.bf16.msra.mxu0 %v3437_v26  ;;  %2750 = vmatpush1.bf16.msra.mxu1 %v3440_v35 }
 0x57c   :  { %2720 = vmatprep.subr.bf16.mxu0 %v3445_v51  ;;  %2752 = vmatprep.subr.bf16.mxu1 %v3447_v1 }
 0x57f   :  { %2722 = vmatpush1.bf16.msra.mxu0 %v3449_v2  ;;  %2754 = vmatpush1.bf16.msra.mxu1 %v3452_v13 }
 0x580   :  { %2724 = vmatprep.subr.bf16.mxu0 %v3457_v32  ;;  %2756 = vmatprep.subr.bf16.mxu1 %v3459_v48 }
 0x583   :  { %2726 = vmatpush1.bf16.msra.mxu0 %v3461_v49  ;;  %2758 = vmatpush1.bf16.msra.mxu1 %v3464_v52 }
 0x584   :  { %2728 = vmatprep.subr.bf16.mxu0 %v3469_v8  ;;  %2760 = vmatprep.subr.bf16.mxu1 %v3471_v12 }
 0x587   :  { %2730 = vmatpush1.bf16.msra.mxu0 %v3473_v19  ;;  %2762 = vmatpush1.bf16.msra.mxu1 %v3476_v27 }
 0x588   :  { %2732 = vmatprep.subr.bf16.mxu0 %v3480_v30  ;;  %2764 = vmatprep.subr.bf16.mxu1 %v3482_v31 }
 0x58b   :  { %2734 = vmatpush1.bf16.msra.mxu0 %v3485_v53  ;;  %2766 = vmatpush1.bf16.msra.mxu1 %v3489_v7 }
 0x58c   :  { %2736 = vmatprep.subr.bf16.mxu0 %v3491_v15  ;;  %2768 = vmatprep.subr.bf16.mxu1 %v3493_v34  ;;  %v1730_v15 = vrot.slane %v3608_v58, 6  ;;  %v2781_v58 = vpack.c.bf16 %v2003_v54, %v1999_v40  ;;  %v2044_v40 = vld [vmem:[#allocation7 + $0x1a8] sm:$0xff] }
 0x58f   :  { %2738 = vmatpush1.bf16.msra.mxu0 %v3496_v55  ;;  %2770 = vmatpush1.bf16.msra.mxu1 %v3500_v57 }
 0x590   :  { %2740 = vmatprep.subr.bf16.mxu0 %v3547_v20  ;;  %2772 = vmatprep.subr.bf16.mxu1 %v3549_v61 }
 0x593   :  { %2742 = vmatpush1.bf16.msra.mxu0 %v3551_v43  ;;  %2774 = vmatpush1.bf16.msra.mxu1 %v3554_v44 }
 0x594   :  { %2776 = vmatprep.subr.bf16.mxu0 %v2775_v6  ;;  %2808 = vmatprep.subr.bf16.mxu1 %v2807_v9  ;;  %v2029_v6 = vld [vmem:[#allocation7 + $0x130] sm:$0xff]  ;;  %v2034_v9 = vld [vmem:[#allocation7 + $0x158] sm:$0xff] }
 0x595   :  { %v2825_v46 = vpack.c.bf16 %v2029_v6, %v2025_v11 }
 0x649   :  { %v1618_v18 = vpop.f32.mrb[14].mxu0  ;;  %v1689_v17 = vpop.f32.mrb[14].mxu1 }
 0x64a   :  { %v1698_v4 = vrot.slane %v1618_v18, 6  ;;  %v1620_v22 = vpop.f32.mrb[15].mxu0  ;;  %v1691_v26 = vpop.f32.mrb[15].mxu1  ;;  %v1700_v49 = vrot.slane %v1689_v17, 6  ;;  %v2008_v18 = vld [vmem:[#allocation7 + $0x88] sm:$0xff] }
 0x64b   :  { %v1699_v35 = vrot.slane %v1620_v22, 6  ;;  %v1701_v32 = vrot.slane %v1691_v26, 6  ;;  %v2012_v17 = vld [vmem:[#allocation7 + $0xa8] sm:$0xff]  ;;  %v2014_v26 = vld [vmem:[#allocation7 + $0xb8] sm:$0xff] }
 0x64c   :  { %v1706_v51 = vadd.f32 %v1698_v4, %v3356_v21  ;;  %v1708_v8 = vadd.f32 %v1700_v49, %v3360_v29  ;;  %v2010_v4 = vld [vmem:[#allocation7 + $0x98] sm:$0xff]  ;;  %v2783_v22 = vpack.c.bf16 %v2012_v17, %v2008_v18  ;;  %v2016_v49 = vld [vmem:[#allocation7 + $0xc8] sm:$0xff]  ;;  %v2043_v18 = vld [vmem:[#allocation7 + $0x1a0] sm:$0xff] }
 0x64d   :  { %v1707_v1 = vadd.f32 %v1699_v35, %v3358_v28  ;;  %v1709_v48 = vadd.f32 %v1701_v32, %v3362_v37  ;;  %v2007_v35 = vld [vmem:[#allocation7 + $0x80] sm:$0xff]  ;;  %v2013_v32 = vld [vmem:[#allocation7 + $0xb0] sm:$0xff] }
 0x64e   :  { %v2310_v2 = vmul.f32 -1.442695, %v1706_v51  ;;  %v2011_v51 = vld [vmem:[#allocation7 + $0xa0] sm:$0xff]  ;;  %v2041_v17 = vld [vmem:[#allocation7 + $0x190] sm:$0xff] }
 0x64f   :  { %v2311_v13 = vmul.f32 -1.442695, %v1707_v1  ;;  %v2312_v52 = vmul.f32 -1.442695, %v1709_v48  ;;  %v2815_v1 = vpack.c.bf16 %v2014_v26, %v2010_v4  ;;  %v2045_v4 = vld [vmem:[#allocation7 + $0x1b0] sm:$0xff] }
 0x650   :  { %2930 = vpow2.f32 %v2310_v2  ;;  %v2785_v2 = vpack.c.bf16 %v2011_v51, %v2007_v35  ;;  %v2833_v26 = vpack.c.bf16 %v2045_v4, %v2041_v17 }
 0x651   :  { %2932 = vpow2.f32 %v2311_v13  ;;  %v2009_v13 = vld [vmem:[#allocation7 + $0x90] sm:$0xff] }
 0x652   :  { %2934 = vpow2.f32 %v2312_v52  ;;  %v2817_v48 = vpack.c.bf16 %v2013_v32, %v2009_v13  ;;  %v2020_v52 = vld [vmem:[#allocation7 + $0xe8] sm:$0xff] }
 0x653   :  { %2936 = vtanh.f32 %v1708_v8  ;;  %v2018_v8 = vld [vmem:[#allocation7 + $0xd8] sm:$0xff] }
 0x65a   :  { %v2931_v12 = vpop.eup %2930 }
 0x65b   :  { %v2933_v19 = vpop.eup %2932  ;;  %v1713_v27 = vadd.f32 1.0, %v2931_v12  ;;  %v2787_v12 = vpack.c.bf16 %v2020_v52, %v2016_v49 }
 0x65c   :  { %v1719_v30 = vadd.f32 1.0, %v2933_v19  ;;  %v2935_v31 = vpop.eup %2934  ;;  %v2022_v19 = vld [vmem:[#allocation7 + $0xf8] sm:$0xff] }
 0x65d   :  { %2938 = vrcp.f32 %v1713_v27  ;;  %v2937_v53 = vpop.eup %2936  ;;  %v1726_v57 = vadd.f32 1.0, %v2935_v31  ;;  %v2015_v27 = vld [vmem:[#allocation7 + $0xc0] sm:$0xff]  ;;  %v2819_v31 = vpack.c.bf16 %v2022_v19, %v2018_v8 }
 0x65e   :  { %2940 = vrcp.f32 %v1719_v30  ;;  %v2019_v30 = vld [vmem:[#allocation7 + $0xe0] sm:$0xff] }
 0x65f   :  { %2942 = vrcp.f32 %v1726_v57  ;;  %v2028_v57 = vld [vmem:[#allocation7 + $0x128] sm:$0xff] }
 0x667   :  { %v2939_v7 = vpop.eup %2938 }
 0x668   :  { %v2941_v34 = vpop.eup %2940  ;;  %v1733_v55 = vmul.f32 %v2939_v7, %v2937_v53  ;;  %v2789_v53 = vpack.c.bf16 %v2019_v30, %v2015_v27  ;;  %v2017_v7 = vld [vmem:[#allocation7 + $0xd0] sm:$0xff] }
 0x669   :  { %v1732_v3 = vmul.f32 %v2941_v34, %v1730_v15  ;;  %v2943_v63 = vpop.eup %2942  ;;  %v2021_v15 = vld [vmem:[#allocation7 + $0xf0] sm:$0xff] }
 0x66a   :  { %v2821_v34 = vpack.c.bf16 %v2021_v15, %v2017_v7 }
 0x66b   :  { %v3648_v33 = vadd.f32 %v1733_v55, %v1732_v3  ;;  %v2024_v55 = vld [vmem:[#allocation7 + $0x108] sm:$0xff]  ;;  %v2026_v3 = vld [vmem:[#allocation7 + $0x118] sm:$0xff] }
 0x66d   :  { %2944 = vtanh.f32 %v3648_v33 }
 0x677   :  { %v2945_v41 = vpop.eup %2944 }
 0x678   :  { %v1736_v45 = vmul.f32 %v2945_v41, %v2943_v63  ;;  %v2791_v63 = vpack.c.bf16 %v2028_v57, %v2024_v55  ;;  %v2030_v41 = vld [vmem:[#allocation7 + $0x138] sm:$0xff] }
 0x679   :  { %v2823_v59 = vpack.c.bf16 %v2030_v41, %v2026_v3 }
 0x67a   :  { %1737 = vst [vmem:[#allocation8 + $0x8] sm:$0xc] %v1736_v45  ;;  %v1803_v47 = vrot.slane %v1736_v45, 2  ;;  %v2023_v45 = vld [vmem:[#allocation7 + $0x100] sm:$0xff] }
 0x67c   :  { %1870 = vmatmul.mubr.f32.vlgmr.msra.gmra.mrb[16].mxu0 %v1803_v47  ;;  %1941 = vmatmul.mubr.f32.vlgmr.msra.gmra.mrb[16].mxu1 %v1803_v47  ;;  %v2027_v47 = vld [vmem:[#allocation7 + $0x120] sm:$0xff] }
 0x67d   :  { %2122 = vmatprep.mubr.f32.mxu0 %v3125_v0  ;;  %2193 = vmatprep.mubr.f32.mxu1 %v3125_v0  ;;  %v2779_v0 = vpack.c.bf16 %v2004_v42, %v2000_v38  ;;  %v2793_v10 = vpack.c.bf16 %v2027_v47, %v2023_v45  ;;  %v2035_v38 = vld [vmem:[#allocation7 + $0x160] sm:$0xff]  ;;  %v2033_v42 = vld [vmem:[#allocation7 + $0x150] sm:$0xff] }
 0x67e   :  { %2778 = vmatpush1.bf16.msra.mxu0 %v2777_v50  ;;  %2810 = vmatpush1.bf16.msra.mxu1 %v2809_v36  ;;  %v2038_v50 = vld [vmem:[#allocation7 + $0x178] sm:$0xff]  ;;  %v2031_v36 = vld [vmem:[#allocation7 + $0x140] sm:$0xff] }
 0x67f   :  { %2780 = vmatprep.subr.bf16.mxu0 %v2779_v0  ;;  %2812 = vmatprep.subr.bf16.mxu1 %v2811_v5  ;;  %v2827_v56 = vpack.c.bf16 %v2038_v50, %v2034_v9  ;;  %v2797_v60 = vpack.c.bf16 %v2035_v38, %v2031_v36  ;;  %v2037_v0 = vld [vmem:[#allocation7 + $0x170] sm:$0xff]  ;;  %v2799_v5 = vpack.c.bf16 %v2044_v40, %v2040_v39 }
 0x680   :  { %v2829_v54 = vpack.c.bf16 %v2037_v0, %v2033_v42 }
 0x682   :  { %2782 = vmatpush1.bf16.msra.mxu0 %v2781_v58  ;;  %2814 = vmatpush1.bf16.msra.mxu1 %v2813_v23  ;;  %v2042_v58 = vld [vmem:[#allocation7 + $0x198] sm:$0xff] }
 0x683   :  { %2784 = vmatprep.subr.bf16.mxu0 %v2783_v22  ;;  %2816 = vmatprep.subr.bf16.mxu1 %v2815_v1  ;;  %v2831_v23 = vpack.c.bf16 %v2046_v62, %v2042_v58  ;;  %v2801_v22 = vpack.c.bf16 %v2043_v18, %v2039_v16 }
 0x686   :  { %2786 = vmatpush1.bf16.msra.mxu0 %v2785_v2  ;;  %2818 = vmatpush1.bf16.msra.mxu1 %v2817_v48 }
 0x687   :  { %2788 = vmatprep.subr.bf16.mxu0 %v2787_v12  ;;  %2820 = vmatprep.subr.bf16.mxu1 %v2819_v31 }
 0x68a   :  { %2790 = vmatpush1.bf16.msra.mxu0 %v2789_v53  ;;  %2822 = vmatpush1.bf16.msra.mxu1 %v2821_v34  ;;  %v1983_v34 = vrot.slane %v3648_v33, 6 }
 0x68b   :  { %2792 = vmatprep.subr.bf16.mxu0 %v2791_v63  ;;  %2824 = vmatprep.subr.bf16.mxu1 %v2823_v59 }
 0x68e   :  { %2794 = vmatpush1.bf16.msra.mxu0 %v2793_v10  ;;  %2826 = vmatpush1.bf16.msra.mxu1 %v2825_v46 }
 0x68f   :  { %2796 = vmatprep.subr.bf16.mxu0 %v2795_v14  ;;  %2828 = vmatprep.subr.bf16.mxu1 %v2827_v56 }
 0x692   :  { %2798 = vmatpush1.bf16.msra.mxu0 %v2797_v60  ;;  %2830 = vmatpush1.bf16.msra.mxu1 %v2829_v54 }
 0x693   :  { %2800 = vmatprep.subr.bf16.mxu0 %v2799_v5  ;;  %2832 = vmatprep.subr.bf16.mxu1 %v2831_v23 }
 0x696   :  { %2802 = vmatpush1.bf16.msra.mxu0 %v2801_v22  ;;  %2834 = vmatpush1.bf16.msra.mxu1 %v2833_v26 }
 0x697   :  { %2804 = vmatprep.subr.bf16.mxu0 %v3547_v20  ;;  %2836 = vmatprep.subr.bf16.mxu1 %v3549_v61 }
 0x69a   :  { %2806 = vmatpush1.bf16.msra.mxu0 %v3551_v43  ;;  %2838 = vmatpush1.bf16.msra.mxu1 %v3554_v44 }
 0x74f   :  { %v1871_v35 = vpop.f32.mrb[16].mxu0  ;;  %v1942_v51 = vpop.f32.mrb[16].mxu1 }
 0x750   :  { %v1951_v1 = vrot.slane %v1871_v35, 4  ;;  %v1873_v2 = vpop.f32.mrb[17].mxu0  ;;  %v1944_v13 = vpop.f32.mrb[17].mxu1  ;;  %v1953_v61 = vrot.slane %v1942_v51, 4 }
 0x751   :  { %v1952_v32 = vrot.slane %v1873_v2, 4  ;;  %v1954_v12 = vrot.slane %v1944_v13, 4 }
 0x752   :  { %v1959_v48 = vadd.f32 %v1951_v1, %v3356_v21  ;;  %v1961_v44 = vadd.f32 %v1953_v61, %v3360_v29 }
 0x753   :  { %v1960_v49 = vadd.f32 %v1952_v32, %v3358_v28  ;;  %v1962_v20 = vadd.f32 %v1954_v12, %v3362_v37 }
 0x754   :  { %v2313_v52 = vmul.f32 -1.442695, %v1959_v48 }
 0x755   :  { %v2314_v8 = vmul.f32 -1.442695, %v1960_v49  ;;  %v2315_v43 = vmul.f32 -1.442695, %v1962_v20 }
 0x756   :  { %2946 = vpow2.f32 %v2313_v52 }
 0x757   :  { %2948 = vpow2.f32 %v2314_v8 }
 0x758   :  { %2950 = vpow2.f32 %v2315_v43 }
 0x759   :  { %2952 = vtanh.f32 %v1961_v44 }
 0x760   :  { %v2947_v19 = vpop.eup %2946 }
 0x761   :  { %v2949_v27 = vpop.eup %2948  ;;  %v1966_v30 = vadd.f32 1.0, %v2947_v19 }
 0x762   :  { %v1972_v31 = vadd.f32 1.0, %v2949_v27  ;;  %v2951_v53 = vpop.eup %2950 }
 0x763   :  { %2954 = vrcp.f32 %v1966_v30  ;;  %v2953_v7 = vpop.eup %2952  ;;  %v1979_v3 = vadd.f32 1.0, %v2951_v53 }
 0x764   :  { %2956 = vrcp.f32 %v1972_v31 }
 0x765   :  { %2958 = vrcp.f32 %v1979_v3 }
 0x76d   :  { %v2955_v15 = vpop.eup %2954 }
 0x76e   :  { %v2957_v55 = vpop.eup %2956  ;;  %v1986_v57 = vmul.f32 %v2955_v15, %v2953_v7 }
 0x76f   :  { %v1985_v63 = vmul.f32 %v2957_v55, %v1983_v34  ;;  %v2959_v45 = vpop.eup %2958 }
 0x771   :  { %v1987_v41 = vadd.f32 %v1986_v57, %v1985_v63 }
 0x773   :  { %2960 = vtanh.f32 %v1987_v41  ;;  %v2236_v62 = vrot.slane %v1987_v41, 6 }
 0x77d   :  { %v2961_v47 = vpop.eup %2960 }
 0x77e   :  { %v1989_v59 = vmul.f32 %v2961_v47, %v2959_v45 }
 0x780   :  { %1990 = vst [vmem:[#allocation8 + $0x8] sm:$0x30] %v1989_v59  ;;  %v2056_v10 = vrot.slane %v1989_v59, 4 }
 0x782   :  { %2123 = vmatmul.mubr.f32.vlgmr.msra.gmra.mrb[18].mxu0 %v2056_v10  ;;  %2194 = vmatmul.mubr.f32.vlgmr.msra.gmra.mrb[18].mxu1 %v2056_v10 }
 0x855   :  { %v2124_v11 = vpop.f32.mrb[18].mxu0  ;;  %v2195_v6 = vpop.f32.mrb[18].mxu1 }
 0x856   :  { %v2204_v24 = vrot.slane %v2124_v11, 2  ;;  %v2126_v46 = vpop.f32.mrb[19].mxu0  ;;  %v2197_v25 = vpop.f32.mrb[19].mxu1  ;;  %v2206_v42 = vrot.slane %v2195_v6, 2 }
 0x857   :  { %v2205_v33 = vrot.slane %v2126_v46, 2  ;;  %v2207_v36 = vrot.slane %v2197_v25, 2 }
 0x858   :  { %v2212_v9 = vadd.f32 %v2204_v24, %v3356_v21  ;;  %v2214_v0 = vadd.f32 %v2206_v42, %v3360_v29 }
 0x859   :  { %v2213_v50 = vadd.f32 %v2205_v33, %v3358_v28  ;;  %v2215_v38 = vadd.f32 %v2207_v36, %v3362_v37 }
 0x85a   :  { %v2316_v14 = vmul.f32 -1.442695, %v2212_v9 }
 0x85b   :  { %v2317_v56 = vmul.f32 -1.442695, %v2213_v50  ;;  %v2318_v60 = vmul.f32 -1.442695, %v2215_v38 }
 0x85c   :  { %2962 = vpow2.f32 %v2316_v14 }
 0x85d   :  { %2964 = vpow2.f32 %v2317_v56 }
 0x85e   :  { %2966 = vpow2.f32 %v2318_v60 }
 0x85f   :  { %2968 = vtanh.f32 %v2214_v0 }
 0x866   :  { %v2963_v39 = vpop.eup %2962 }
 0x867   :  { %v2965_v40 = vpop.eup %2964  ;;  %v2219_v54 = vadd.f32 1.0, %v2963_v39 }
 0x868   :  { %v2225_v5 = vadd.f32 1.0, %v2965_v40  ;;  %v2967_v21 = vpop.eup %2966 }
 0x869   :  { %2970 = vrcp.f32 %v2219_v54  ;;  %v2969_v28 = vpop.eup %2968  ;;  %v2232_v18 = vadd.f32 1.0, %v2967_v21 }
 0x86a   :  { %2972 = vrcp.f32 %v2225_v5 }
 0x86b   :  { %2974 = vrcp.f32 %v2232_v18 }
 0x873   :  { %v2971_v58 = vpop.eup %2970 }
 0x874   :  { %v2973_v16 = vpop.eup %2972  ;;  %v2239_v23 = vmul.f32 %v2971_v58, %v2969_v28 }
 0x875   :  { %v2238_v37 = vmul.f32 %v2973_v16, %v2236_v62  ;;  %v2975_v29 = vpop.eup %2974 }
 0x877   :  { %v2240_v17 = vadd.f32 %v2239_v23, %v2238_v37 }
 0x879   :  { %2976 = vtanh.f32 %v2240_v17  ;;  %2245 = vst [vmem:[#allocation11 - $0x6] sm:$0xc0] %v2240_v17 }
 0x883   :  { %v2977_v4 = vpop.eup %2976 }
 0x884   :  { %v2242_v22 = vmul.f32 %v2977_v4, %v2975_v29 }
 0x886   :  { %2243 = vst [vmem:[#allocation8 + $0x8] sm:$0xc0] %v2242_v22  ;;  %2244 = vst [vmem:[#allocation9 - $0x6] sm:$0xc0] %v2242_v22 }
 0x887   :  { %3055 = shalt.err (!%p3052_p0)
}
 0x888   :  { %s3056_s20 = scalar_lea.hbm %s3724_s5, 32 }
 0x889   :  { %p3057_p1 = scmp.ne.s32.totalorder %s3724_s5, %s3056_s20  ;;  %p3060_p2 = scmp.lt.u32.totalorder %s3056_s20, %s3724_s5 }
 0x88b   :  { %p3062_p3 = pnand %p3060_p2, %p3057_p1 }
 0x88d   :  { %3065 = shalt.err (!%p3062_p3)
}
 0x88e   :  { %2267 = dma.vmem_to_hbm [thread:$0]  %s2265_s8, 32, %s3724_s5, [#allocation10]  }
 0x88f   :  { %s3066_s28 = scalar_lea.vmem %s3666_s14, 256  ;;  %p3071_p5 = scmp.lt.s32.totalorder %s3666_s14, %s3666_s14 }
 0x890   :  { %p3067_p4 = scmp.ne.s32.totalorder %s3666_s14, %s3066_s28  ;;  %p3072_p6 = scmp.lt.s32.totalorder %s3066_s28, %s3066_s28 }
 0x892   :  { %p3073_p7 = por %p3072_p6, %p3071_p5 }
 0x894   :  { %p3074_p8 = pnand %p3073_p7, %p3067_p4 }
 0x896   :  { %3077 = shalt.err (!%p3074_p8)
}
 0x897   :  { %s3078_s9 = scalar_lea.hbm %s3723_s4, 256 }
 0x898   :  { %p3079_p9 = scmp.ne.s32.totalorder %s3723_s4, %s3078_s9  ;;  %p3082_p10 = scmp.lt.u32.totalorder %s3078_s9, %s3723_s4 }
 0x89a   :  { %p3084_p11 = pnand %p3082_p10, %p3079_p9 }
 0x89c   :  { %3087 = shalt.err (!%p3084_p11)
}
 0x89d   :  { %2257 = dma.vmem_to_hbm [thread:$0]  %s3666_s14, 256, %s3723_s4, [#allocation4], %s3122_s1, %s3122_s1, %s3123_s21  }
 0x89e   :  { %s3088_s7 = scalar_lea.vmem %s3668_s16, 32  ;;  %p3093_p13 = scmp.lt.s32.totalorder %s3668_s16, %s3668_s16 }
 0x89f   :  { %p3089_p12 = scmp.ne.s32.totalorder %s3668_s16, %s3088_s7  ;;  %p3094_p0 = scmp.lt.s32.totalorder %s3088_s7, %s3088_s7 }
 0x8a1   :  { %p3095_p1 = por %p3094_p0, %p3093_p13 }
 0x8a3   :  { %p3096_p2 = pnand %p3095_p1, %p3089_p12 }
 0x8a5   :  { %3099 = shalt.err (!%p3096_p2)
}
 0x8a6   :  { %s3100_s13 = scalar_lea.hbm %s3725_s6, 32 }
 0x8a7   :  { %p3101_p3 = scmp.ne.s32.totalorder %s3725_s6, %s3100_s13  ;;  %p3104_p4 = scmp.lt.u32.totalorder %s3100_s13, %s3725_s6 }
 0x8a9   :  { %p3106_p5 = pnand %p3104_p4, %p3101_p3 }
 0x8ab   :  { %3109 = shalt.err (!%p3106_p5)
}
 0x8ac   :  { %2277 = dma.vmem_to_hbm [thread:$0]  %s3668_s16, 32, %s3725_s6, [#allocation10]  }
 0x8ad   :  { %3114 = dma.done.wait [#allocation4], 256  }
 0x8ae   :  { %3115 = vsyncadd [#allocation4], 4294967040 }
 0x8af   :  { %3116 = dma.done.wait [#allocation10], 64  }
 0x8b0   :  { %3117 = vsyncadd [#allocation10], 4294967232 }
 0x8b1   :  { %2287 = vsyncpa [#allocation3], 1 }
 0x8b2   :  { %2288 = vsyncpa [#allocation6], 1 }
 0x8b3   :  { %2289 = vsyncpa [#allocation4], 1 }
 0x8b4   :  { %2290 = vsyncpa [#allocation10], 1 }

</bundles_post_ra>
